<compile_context>
chip_gen: v7x
topology: tpu7x:2x2x1
jax: 0.10.0
libtpu: 0.0.40
codegen_flags: <defaults>
</compile_context>

<pallas_src>
import functools

import jax
import jax.numpy as jnp
from jax.experimental import pallas as pl
from jax.experimental.pallas import tpu as pltpu


LEAKY_SLOPE = 0.2
LANE = 128                      # lane-dense output-channel padding granule


def _leaky(x, slope=LEAKY_SLOPE):
    return jnp.where(x >= 0.0, x, slope * x)


def _round_up(x, m):
    return (x + m - 1) // m * m


# ------------------------------ Pallas kernels ------------------------------


def _convT_kernel(x_ref, w_ref, b_ref, o_ref, *, act):
    """One tile of the polyphase transposed conv: (TM,4Cin)@(4Cin,Cp)+b -> act."""
    x = x_ref[...].astype(w_ref.dtype)                       # bf16
    y = jnp.dot(x, w_ref[...], preferred_element_type=jnp.float32)
    y = y + b_ref[...]
    if act == "leaky":
        y = _leaky(y)
    elif act == "tanh":
        y = jnp.tanh(y)
    o_ref[...] = y.astype(o_ref.dtype)


def _convT_stats_kernel(x_ref, w_ref, b_ref, o_ref, stats_ref):
    """Conv tile (no activation) + per-tile per-(phase,channel) sum / sumsq.

    Stats are written per grid step (parallel grid, no revisit); the tiny
    reduction over grid steps happens in XLA so both TensorCores can be used
    on v7x.  Stats use the f32 pre-rounding accumulator.
    """
    x = x_ref[...].astype(w_ref.dtype)
    y = jnp.dot(x, w_ref[...], preferred_element_type=jnp.float32)
    y = y + b_ref[...]
    o_ref[...] = y.astype(o_ref.dtype)
    stats_ref[...] = jnp.concatenate(
        [jnp.sum(y, axis=0, keepdims=True),
         jnp.sum(y * y, axis=0, keepdims=True)], axis=0)      # (2, Cp)


# --------------------------- wrapper-side glue (XLA) -------------------------


def _polyphase_weight(w_pt):
    """PyTorch ConvTranspose2d weight (Cin,Cout,3,3) -> (4*Cin, 4*Cout) block.

    Row blocks: shifted inputs [x(iy,ix), x(iy,ix+1), x(iy+1,ix), x(iy+1,ix+1)].
    Col blocks: output phases  [(0,0), (0,1), (1,0), (1,1)]  (oy=2iy+ry, ...).
    """
    cin, cout = w_pt.shape[0], w_pt.shape[1]
    W = lambda ky, kx: w_pt[:, :, ky, kx]
    Z = jnp.zeros((cin, cout), w_pt.dtype)
    rows = [
        [W(1, 1), W(1, 2), W(2, 1), W(2, 2)],   # x[iy  , ix  ]
        [Z,       W(1, 0), Z,       W(2, 0)],   # x[iy  , ix+1]
        [Z,       Z,       W(0, 1), W(0, 2)],   # x[iy+1, ix  ]
        [Z,       Z,       Z,       W(0, 0)],   # x[iy+1, ix+1]
    ]
    return jnp.concatenate([jnp.concatenate(r, axis=1) for r in rows], axis=0)


def _shifted_cat(x_nhwc):
    """(N,H,W,C) -> (N*H*W, 4*C): channel-concat of the 4 unit shifts.

    Bottom/right halo is an exact zero (the transposed conv's missing input).
    Fuses with any preceding elementwise BN+LeakyReLU under jit.
    """
    n, h, w, c = x_nhwc.shape
    xp = jnp.pad(x_nhwc, ((0, 0), (0, 1), (0, 1), (0, 0)))
    xc = jnp.concatenate(
        [xp[:, :h, :w, :], xp[:, :h, 1:, :], xp[:, 1:, :w, :], xp[:, 1:, 1:, :]],
        axis=-1)
    return xc.reshape(n * h * w, 4 * c)


def _interleave_phases(y, n, h, w, cout):
    """(N*H*W, Cp) phase-major kernel output -> (N, 2H, 2W, Cout).

    The channel slice + transpose + reshape is a single fused XLA copy pass.
    """
    y = y[:, :4 * cout].reshape(n, h, w, 2, 2, cout)
    y = jnp.transpose(y, (0, 1, 3, 2, 4, 5))
    return y.reshape(n, 2 * h, 2 * w, cout)


def _pick_tm(m, tm_max):
    """Largest multiple-of-8 divisor of m that is <= tm_max (no giant-tile fallback)."""
    tm_max = max(int(tm_max), 1)
    if m <= tm_max:
        return m
    for tm in range(tm_max - tm_max % 8, 7, -8):
        if m % tm == 0:
            return tm
    for tm in range(min(tm_max, m), 0, -1):
        if m % tm == 0:
            return tm
    return 1


# ------------------------------ layer wrapper --------------------------------


def conv_transpose2d_pallas(x_nhwc, w_pt, bias, *, act=None, with_stats=False,
                            out_dtype=jnp.bfloat16, tm_max=256):
    """ConvTranspose2d(kernel=3, stride=2, padding=1, output_padding=1) (+act).

    x_nhwc : (N, H, W, Cin)
    w_pt   : (Cin, Cout, 3, 3)   PyTorch ConvTranspose2d weight layout
    bias   : (Cout,)
    returns: (N, 2H, 2W, Cout) in out_dtype
             [, per-tile (grid, 2, Cp) f32 sum/sumsq stats when with_stats]
    """
    n, h, w, cin = x_nhwc.shape
    cout = w_pt.shape[1]
    m = n * h * w
    cin4, cout4 = 4 * cin, 4 * cout
    coutp = _round_up(max(cout4, LANE), LANE)       # lane-dense output width

    # Inter-layer operands in bf16 (half the shuffle/DMA bytes, MXU fast path).
    xcat = _shifted_cat(x_nhwc).astype(jnp.bfloat16)                 # (M, 4Cin)
    wbig = jnp.pad(_polyphase_weight(w_pt),
                   ((0, 0), (0, coutp - cout4))).astype(jnp.bfloat16)  # (4Cin, Cp)
    b4 = jnp.pad(jnp.tile(bias, 4), (0, coutp - cout4))
    b4 = b4.reshape(1, coutp).astype(jnp.float32)

    # Tile rows: cap at tm_max, keep double-buffered row tiles + resident
    # weight under a conservative VMEM budget, and always divide m exactly.
    out_itemsize = jnp.dtype(out_dtype).itemsize
    fixed_bytes = 2 * (cin4 * coutp * 2 + coutp * 4)      # weight + bias buffers
    row_bytes = 2 * (cin4 * 2 + coutp * out_itemsize)     # 2x-buffered in/out rows
    budget = 24 * 1024 * 1024
    cap = max(8, (budget - fixed_bytes) // max(row_bytes, 1))
    tm = _pick_tm(m, min(tm_max, cap))
    grid = (m // tm,)

    in_specs = [
        pl.BlockSpec((tm, cin4), lambda i: (i, 0)),
        pl.BlockSpec((cin4, coutp), lambda i: (0, 0)),    # resident (constant revisit)
        pl.BlockSpec((1, coutp), lambda i: (0, 0)),
    ]
    out_spec_y = pl.BlockSpec((tm, coutp), lambda i: (i, 0))
    compiler_params = pltpu.CompilerParams(
        dimension_semantics=("parallel",),                # no serial axis anywhere
        vmem_limit_bytes=32 * 1024 * 1024,
    )

    if with_stats:
        out, stats = pl.pallas_call(
            _convT_stats_kernel,
            grid=grid,
            in_specs=in_specs,
            out_specs=(out_spec_y,
                       pl.BlockSpec((None, 2, coutp), lambda i: (i, 0, 0))),
            out_shape=(jax.ShapeDtypeStruct((m, coutp), out_dtype),
                       jax.ShapeDtypeStruct((grid[0], 2, coutp), jnp.float32)),
            compiler_params=compiler_params,
        )(xcat, wbig, b4)
    else:
        out = pl.pallas_call(
            functools.partial(_convT_kernel, act=act),
            grid=grid,
            in_specs=in_specs,
            out_specs=out_spec_y,
            out_shape=jax.ShapeDtypeStruct((m, coutp), out_dtype),
            compiler_params=compiler_params,
        )(xcat, wbig, b4)
        stats = None

    y = _interleave_phases(out, n, h, w, cout)            # (N, 2H, 2W, Cout)
    return (y, stats) if with_stats else y


# ------------------------------- BatchNorm glue -------------------------------


def _bn_scale_shift(stats, cout, count, eps, gamma, beta):
    """Training-mode BatchNorm2d (biased batch var) -> per-channel (scale, shift)."""
    s = stats[:, 0, :4 * cout].reshape(-1, 4, cout).sum(axis=(0, 1))
    sq = stats[:, 1, :4 * cout].reshape(-1, 4, cout).sum(axis=(0, 1))
    mean = s / count
    var = jnp.maximum(sq / count - mean * mean, 0.0)
    scale = gamma * jax.lax.rsqrt(var + eps)
    shift = beta - mean * scale
    return scale, shift


def _bn_leaky(y, scale, shift):
    """BatchNorm (affine form) + LeakyReLU in f32; fuses into the next layer's
    pad/shift-concat XLA pass (no extra HBM round trip)."""
    yf = y.astype(jnp.float32) * scale + shift
    return _leaky(yf).astype(y.dtype)


# --------------------------- module (Conv) forward ---------------------------


def init_conv_params(key, in_channels, out_channels, ngf):
    """Deterministic synthetic parameters matching the module's layer shapes."""
    chans = [in_channels, ngf * 32, ngf * 16, ngf * 8, ngf * 4, ngf * 2, out_channels]
    layers = []
    for li in range(6):
        cin, cout = chans[li], chans[li + 1]
        key, kw, kb = jax.random.split(key, 3)
        bound = 1.0 / jnp.sqrt(jnp.float32(cin * 9))
        w = jax.random.uniform(kw, (cin, cout, 3, 3), jnp.float32, -bound, bound)
        b = jax.random.uniform(kb, (cout,), jnp.float32, -bound, bound)
        layers.append((w, b))
    return layers


def conv_forward(x, layers, ngf):
    """x: (N, in_channels) -> (N, out_channels, 64, 64)  (NCHW, like PyTorch)."""
    n, cin = x.shape
    h = x.reshape(n, 1, 1, cin).astype(jnp.float32)   # unsqueeze(-1).unsqueeze(-1), NHWC

    # TODO(synk): layers 0-2 (M = 2/8/32 rows) could be fused into one
    # pallas_call to shave dispatch latency; kept as separate calls for clarity.
    h = conv_transpose2d_pallas(h, layers[0][0], layers[0][1], act="leaky")

    for i in range(4):
        w, b = layers[1 + i]
        cout = ngf * 2 ** (4 - i)
        if i >= 2:
            # conv (raw bf16 output) + in-kernel f32 stats; BatchNorm2d(cout, cout)
            # (second positional arg is eps = num_features, exactly as the
            # reference module passes it) + LeakyReLU applied in XLA, training-
            # mode batch statistics with biased variance.
            h, stats = conv_transpose2d_pallas(h, w, b, act=None, with_stats=True)
            nb, hb, wb_, _ = h.shape
            gamma = jnp.ones((cout,), jnp.float32)    # BN affine defaults
            beta = jnp.zeros((cout,), jnp.float32)
            scale, shift = _bn_scale_shift(stats, cout, float(nb * hb * wb_),
                                           float(cout), gamma, beta)
            h = _bn_leaky(h, scale, shift)
        else:
            h = conv_transpose2d_pallas(h, w, b, act="leaky")

    # final ConvTranspose2d(ngf*2, out_channels) + Tanh, f32 output.
    h = conv_transpose2d_pallas(h, layers[5][0], layers[5][1], act="tanh",
                                out_dtype=jnp.float32)

    # back to NCHW to match the PyTorch module's output convention
    return jnp.transpose(h, (0, 3, 1, 2))


# TODO(synk): BatchNorm running_mean/running_var bookkeeping (training-state
# side effect) is not reproduced; it does not affect the forward output.


if __name__ == "__main__":
    IN_CHANNELS, OUT_CHANNELS, NGF, BATCH = 4, 3, 2, 2

    key = jax.random.PRNGKey(0)
    kx, kp = jax.random.split(key)
    x = jax.random.normal(kx, (BATCH, IN_CHANNELS), jnp.float32)
    params = init_conv_params(kp, IN_CHANNELS, OUT_CHANNELS, NGF)

    fwd = jax.jit(functools.partial(conv_forward, ngf=NGF))
    y = jax.block_until_ready(fwd(x, params))

    assert y.shape == (BATCH, OUT_CHANNELS, 64, 64), y.shape
    assert bool(jnp.all(jnp.isfinite(y)))
    assert bool(jnp.all(jnp.abs(y) <= 1.0 + 1e-6))  # tanh output range
    print("KERNEL_OK")
</pallas_src>

<mosaic_0001>
module attributes {stable_mosaic.version = 11 : i64} {
  func.func @_convT_kernel(%arg0: i32, %arg1: memref<2x16xbf16, #tpu.memory_space<vmem>>, %arg2: memref<16x256xbf16, #tpu.memory_space<vmem>>, %arg3: memref<1x256xf32, #tpu.memory_space<vmem>>, %arg4: memref<2x256xbf16, #tpu.memory_space<vmem>>) attributes {dimension_semantics = [#tpu.dimension_semantics<parallel>], iteration_bounds = array<i64: 1>, scalar_prefetch = 0 : i64, scratch_operands = 0 : i64, tpu.core_type = #tpu.core_type<tc>, window_params = [{transform_indices = @transform_0, window_bounds = array<i64: 2, 16>}, {pipeline_mode = #tpu.pipeline_mode<synchronous>, transform_indices = @transform_1, window_bounds = array<i64: 16, 256>}, {pipeline_mode = #tpu.pipeline_mode<synchronous>, transform_indices = @transform_2, window_bounds = array<i64: 1, 256>}, {transform_indices = @transform_3, window_bounds = array<i64: 2, 256>}]} {
    %c0 = arith.constant 0 : index
    %c0_0 = arith.constant 0 : index
    %0 = vector.load %arg1[%c0, %c0_0] : memref<2x16xbf16, #tpu.memory_space<vmem>>, vector<2x16xbf16>
    %c0_1 = arith.constant 0 : index
    %c0_2 = arith.constant 0 : index
    %1 = vector.load %arg2[%c0_1, %c0_2] : memref<16x256xbf16, #tpu.memory_space<vmem>>, vector<16x256xbf16>
    %cst = arith.constant dense<0.000000e+00> : vector<2x256xf32>
    %2 = tpu.matmul %0, %1, %cst {dimension_numbers = #tpu.dot_dimension_numbers<[1], [0], [0], [1], [0, 0, 1, 1], [], []>} : vector<2x16xbf16>, vector<16x256xbf16>, vector<2x256xf32> -> vector<2x256xf32>
    %c0_3 = arith.constant 0 : index
    %c0_4 = arith.constant 0 : index
    %3 = vector.load %arg3[%c0_3, %c0_4] : memref<1x256xf32, #tpu.memory_space<vmem>>, vector<1x256xf32>
    %4 = vector.broadcast %3 : vector<1x256xf32> to vector<2x256xf32>
    %5 = arith.addf %2, %4 : vector<2x256xf32>
    %cst_5 = arith.constant 0.000000e+00 : f32
    %6 = vector.broadcast %cst_5 : f32 to vector<2x256xf32>
    %7 = arith.cmpf oge, %5, %6 : vector<2x256xf32>
    %cst_6 = arith.constant 2.000000e-01 : f32
    %8 = vector.broadcast %cst_6 : f32 to vector<2x256xf32>
    %9 = arith.mulf %8, %5 : vector<2x256xf32>
    %10 = arith.select %7, %5, %9 : vector<2x256xi1>, vector<2x256xf32>
    %11 = arith.truncf %10 : vector<2x256xf32> to vector<2x256xbf16>
    %c0_7 = arith.constant 0 : index
    %c0_8 = arith.constant 0 : index
    %12 = vector.load %arg4[%c0_7, %c0_8] : memref<2x256xbf16, #tpu.memory_space<vmem>>, vector<2x256xbf16>
    tpu.vector_store %arg4[%c0_7, %c0_8], %11 {strides = array<i32>} : memref<2x256xbf16, #tpu.memory_space<vmem>>, vector<2x256xbf16>,
    return
  }
  func.func @transform_0(%arg0: i32) -> (i32, i32) {
    %c0_i32 = arith.constant 0 : i32
    %c0_i32_0 = arith.constant 0 : i32
    return %arg0, %c0_i32 : i32, i32
  }
  func.func @transform_1(%arg0: i32) -> (i32, i32) {
    %c0_i32 = arith.constant 0 : i32
    %c0_i32_0 = arith.constant 0 : i32
    %c0_i32_1 = arith.constant 0 : i32
    return %c0_i32, %c0_i32_0 : i32, i32
  }
  func.func @transform_2(%arg0: i32) -> (i32, i32) {
    %c0_i32 = arith.constant 0 : i32
    %c0_i32_0 = arith.constant 0 : i32
    %c0_i32_1 = arith.constant 0 : i32
    return %c0_i32, %c0_i32_0 : i32, i32
  }
  func.func @transform_3(%arg0: i32) -> (i32, i32) {
    %c0_i32 = arith.constant 0 : i32
    %c0_i32_0 = arith.constant 0 : i32
    return %arg0, %c0_i32 : i32, i32
  }
}

module attributes {stable_mosaic.version = 11 : i64} {
  func.func @_convT_kernel(%arg0: i32, %arg1: memref<8x256xbf16, #tpu.memory_space<vmem>>, %arg2: memref<256x128xbf16, #tpu.memory_space<vmem>>, %arg3: memref<1x128xf32, #tpu.memory_space<vmem>>, %arg4: memref<8x128xbf16, #tpu.memory_space<vmem>>) attributes {dimension_semantics = [#tpu.dimension_semantics<parallel>], iteration_bounds = array<i64: 1>, scalar_prefetch = 0 : i64, scratch_operands = 0 : i64, tpu.core_type = #tpu.core_type<tc>, window_params = [{transform_indices = @transform_0, window_bounds = array<i64: 8, 256>}, {pipeline_mode = #tpu.pipeline_mode<synchronous>, transform_indices = @transform_1, window_bounds = array<i64: 256, 128>}, {pipeline_mode = #tpu.pipeline_mode<synchronous>, transform_indices = @transform_2, window_bounds = array<i64: 1, 128>}, {transform_indices = @transform_3, window_bounds = array<i64: 8, 128>}]} {
    %c0 = arith.constant 0 : index
    %c0_0 = arith.constant 0 : index
    %0 = vector.load %arg1[%c0, %c0_0] : memref<8x256xbf16, #tpu.memory_space<vmem>>, vector<8x256xbf16>
    %c0_1 = arith.constant 0 : index
    %c0_2 = arith.constant 0 : index
    %1 = vector.load %arg2[%c0_1, %c0_2] : memref<256x128xbf16, #tpu.memory_space<vmem>>, vector<256x128xbf16>
    %cst = arith.constant dense<0.000000e+00> : vector<8x128xf32>
    %2 = tpu.matmul %0, %1, %cst {dimension_numbers = #tpu.dot_dimension_numbers<[1], [0], [0], [1], [0, 0, 1, 1], [], []>} : vector<8x256xbf16>, vector<256x128xbf16>, vector<8x128xf32> -> vector<8x128xf32>
    %c0_3 = arith.constant 0 : index
    %c0_4 = arith.constant 0 : index
    %3 = vector.load %arg3[%c0_3, %c0_4] : memref<1x128xf32, #tpu.memory_space<vmem>>, vector<1x128xf32>
    %4 = vector.broadcast %3 : vector<1x128xf32> to vector<8x128xf32>
    %5 = arith.addf %2, %4 : vector<8x128xf32>
    %cst_5 = arith.constant 0.000000e+00 : f32
    %6 = vector.broadcast %cst_5 : f32 to vector<8x128xf32>
    %7 = arith.cmpf oge, %5, %6 : vector<8x128xf32>
    %cst_6 = arith.constant 2.000000e-01 : f32
    %8 = vector.broadcast %cst_6 : f32 to vector<8x128xf32>
    %9 = arith.mulf %8, %5 : vector<8x128xf32>
    %10 = arith.select %7, %5, %9 : vector<8x128xi1>, vector<8x128xf32>
    %11 = arith.truncf %10 : vector<8x128xf32> to vector<8x128xbf16>
    %c0_7 = arith.constant 0 : index
    %c0_8 = arith.constant 0 : index
    %12 = vector.load %arg4[%c0_7, %c0_8] : memref<8x128xbf16, #tpu.memory_space<vmem>>, vector<8x128xbf16>
    tpu.vector_store %arg4[%c0_7, %c0_8], %11 {strides = array<i32>} : memref<8x128xbf16, #tpu.memory_space<vmem>>, vector<8x128xbf16>,
    return
  }
  func.func @transform_0(%arg0: i32) -> (i32, i32) {
    %c0_i32 = arith.constant 0 : i32
    %c0_i32_0 = arith.constant 0 : i32
    return %arg0, %c0_i32 : i32, i32
  }
  func.func @transform_1(%arg0: i32) -> (i32, i32) {
    %c0_i32 = arith.constant 0 : i32
    %c0_i32_0 = arith.constant 0 : i32
    %c0_i32_1 = arith.constant 0 : i32
    return %c0_i32, %c0_i32_0 : i32, i32
  }
  func.func @transform_2(%arg0: i32) -> (i32, i32) {
    %c0_i32 = arith.constant 0 : i32
    %c0_i32_0 = arith.constant 0 : i32
    %c0_i32_1 = arith.constant 0 : i32
    return %c0_i32, %c0_i32_0 : i32, i32
  }
  func.func @transform_3(%arg0: i32) -> (i32, i32) {
    %c0_i32 = arith.constant 0 : i32
    %c0_i32_0 = arith.constant 0 : i32
    return %arg0, %c0_i32 : i32, i32
  }
}

module attributes {stable_mosaic.version = 11 : i64} {
  func.func @_convT_kernel(%arg0: i32, %arg1: memref<32x128xbf16, #tpu.memory_space<vmem>>, %arg2: memref<128x128xbf16, #tpu.memory_space<vmem>>, %arg3: memref<1x128xf32, #tpu.memory_space<vmem>>, %arg4: memref<32x128xbf16, #tpu.memory_space<vmem>>) attributes {dimension_semantics = [#tpu.dimension_semantics<parallel>], iteration_bounds = array<i64: 1>, scalar_prefetch = 0 : i64, scratch_operands = 0 : i64, tpu.core_type = #tpu.core_type<tc>, window_params = [{transform_indices = @transform_0, window_bounds = array<i64: 32, 128>}, {pipeline_mode = #tpu.pipeline_mode<synchronous>, transform_indices = @transform_1, window_bounds = array<i64: 128, 128>}, {pipeline_mode = #tpu.pipeline_mode<synchronous>, transform_indices = @transform_2, window_bounds = array<i64: 1, 128>}, {transform_indices = @transform_3, window_bounds = array<i64: 32, 128>}]} {
    %c0 = arith.constant 0 : index
    %c0_0 = arith.constant 0 : index
    %0 = vector.load %arg1[%c0, %c0_0] : memref<32x128xbf16, #tpu.memory_space<vmem>>, vector<32x128xbf16>
    %c0_1 = arith.constant 0 : index
    %c0_2 = arith.constant 0 : index
    %1 = vector.load %arg2[%c0_1, %c0_2] : memref<128x128xbf16, #tpu.memory_space<vmem>>, vector<128x128xbf16>
    %cst = arith.constant dense<0.000000e+00> : vector<32x128xf32>
    %2 = tpu.matmul %0, %1, %cst {dimension_numbers = #tpu.dot_dimension_numbers<[1], [0], [0], [1], [0, 0, 1, 1], [], []>} : vector<32x128xbf16>, vector<128x128xbf16>, vector<32x128xf32> -> vector<32x128xf32>
    %c0_3 = arith.constant 0 : index
    %c0_4 = arith.constant 0 : index
    %3 = vector.load %arg3[%c0_3, %c0_4] : memref<1x128xf32, #tpu.memory_space<vmem>>, vector<1x128xf32>
    %4 = vector.broadcast %3 : vector<1x128xf32> to vector<32x128xf32>
    %5 = arith.addf %2, %4 : vector<32x128xf32>
    %cst_5 = arith.constant 0.000000e+00 : f32
    %6 = vector.broadcast %cst_5 : f32 to vector<32x128xf32>
    %7 = arith.cmpf oge, %5, %6 : vector<32x128xf32>
    %cst_6 = arith.constant 2.000000e-01 : f32
    %8 = vector.broadcast %cst_6 : f32 to vector<32x128xf32>
    %9 = arith.mulf %8, %5 : vector<32x128xf32>
    %10 = arith.select %7, %5, %9 : vector<32x128xi1>, vector<32x128xf32>
    %11 = arith.truncf %10 : vector<32x128xf32> to vector<32x128xbf16>
    %c0_7 = arith.constant 0 : index
    %c0_8 = arith.constant 0 : index
    %12 = vector.load %arg4[%c0_7, %c0_8] : memref<32x128xbf16, #tpu.memory_space<vmem>>, vector<32x128xbf16>
    tpu.vector_store %arg4[%c0_7, %c0_8], %11 {strides = array<i32>} : memref<32x128xbf16, #tpu.memory_space<vmem>>, vector<32x128xbf16>,
    return
  }
  func.func @transform_0(%arg0: i32) -> (i32, i32) {
    %c0_i32 = arith.constant 0 : i32
    %c0_i32_0 = arith.constant 0 : i32
    return %arg0, %c0_i32 : i32, i32
  }
  func.func @transform_1(%arg0: i32) -> (i32, i32) {
    %c0_i32 = arith.constant 0 : i32
    %c0_i32_0 = arith.constant 0 : i32
    %c0_i32_1 = arith.constant 0 : i32
    return %c0_i32, %c0_i32_0 : i32, i32
  }
  func.func @transform_2(%arg0: i32) -> (i32, i32) {
    %c0_i32 = arith.constant 0 : i32
    %c0_i32_0 = arith.constant 0 : i32
    %c0_i32_1 = arith.constant 0 : i32
    return %c0_i32, %c0_i32_0 : i32, i32
  }
  func.func @transform_3(%arg0: i32) -> (i32, i32) {
    %c0_i32 = arith.constant 0 : i32
    %c0_i32_0 = arith.constant 0 : i32
    return %arg0, %c0_i32 : i32, i32
  }
}

module attributes {stable_mosaic.version = 11 : i64} {
  func.func @_convT_stats_kernel(%arg0: i32, %arg1: memref<128x64xbf16, #tpu.memory_space<vmem>>, %arg2: memref<64x128xbf16, #tpu.memory_space<vmem>>, %arg3: memref<1x128xf32, #tpu.memory_space<vmem>>, %arg4: memref<128x128xbf16, #tpu.memory_space<vmem>>, %arg5: memref<1x2x128xf32, #tpu.memory_space<vmem>>) attributes {dimension_semantics = [#tpu.dimension_semantics<parallel>], iteration_bounds = array<i64: 1>, scalar_prefetch = 0 : i64, scratch_operands = 0 : i64, tpu.core_type = #tpu.core_type<tc>, window_params = [{transform_indices = @transform_0, window_bounds = array<i64: 128, 64>}, {pipeline_mode = #tpu.pipeline_mode<synchronous>, transform_indices = @transform_1, window_bounds = array<i64: 64, 128>}, {pipeline_mode = #tpu.pipeline_mode<synchronous>, transform_indices = @transform_2, window_bounds = array<i64: 1, 128>}, {transform_indices = @transform_3, window_bounds = array<i64: 128, 128>}, {transform_indices = @transform_4, window_bounds = array<i64: 1, 2, 128>}]} {
    %c0 = arith.constant 0 : index
    %c0_0 = arith.constant 0 : index
    %0 = vector.load %arg1[%c0, %c0_0] : memref<128x64xbf16, #tpu.memory_space<vmem>>, vector<128x64xbf16>
    %c0_1 = arith.constant 0 : index
    %c0_2 = arith.constant 0 : index
    %1 = vector.load %arg2[%c0_1, %c0_2] : memref<64x128xbf16, #tpu.memory_space<vmem>>, vector<64x128xbf16>
    %cst = arith.constant dense<0.000000e+00> : vector<128x128xf32>
    %2 = tpu.matmul %0, %1, %cst {dimension_numbers = #tpu.dot_dimension_numbers<[1], [0], [0], [1], [0, 0, 1, 1], [], []>} : vector<128x64xbf16>, vector<64x128xbf16>, vector<128x128xf32> -> vector<128x128xf32>
    %c0_3 = arith.constant 0 : index
    %c0_4 = arith.constant 0 : index
    %3 = vector.load %arg3[%c0_3, %c0_4] : memref<1x128xf32, #tpu.memory_space<vmem>>, vector<1x128xf32>
    %4 = vector.broadcast %3 : vector<1x128xf32> to vector<128x128xf32>
    %5 = arith.addf %2, %4 : vector<128x128xf32>
    %6 = arith.truncf %5 : vector<128x128xf32> to vector<128x128xbf16>
    %c0_5 = arith.constant 0 : index
    %c0_6 = arith.constant 0 : index
    %7 = vector.load %arg4[%c0_5, %c0_6] : memref<128x128xbf16, #tpu.memory_space<vmem>>, vector<128x128xbf16>
    tpu.vector_store %arg4[%c0_5, %c0_6], %6 {strides = array<i32>} : memref<128x128xbf16, #tpu.memory_space<vmem>>, vector<128x128xbf16>,
    %cst_7 = arith.constant dense<0.000000e+00> : vector<128xf32>
    %8 = vector.multi_reduction <add>, %5, %cst_7 [0] : vector<128x128xf32> to vector<128xf32>
    %9 = vector.shape_cast %8 : vector<128xf32> to vector<1x128xf32>
    %10 = arith.mulf %5, %5 : vector<128x128xf32>
    %cst_8 = arith.constant dense<0.000000e+00> : vector<128xf32>
    %11 = vector.multi_reduction <add>, %10, %cst_8 [0] : vector<128x128xf32> to vector<128xf32>
    %12 = vector.shape_cast %11 : vector<128xf32> to vector<1x128xf32>
    %13 = tpu.concatenate %9, %12 in 0 : vector<1x128xf32>, vector<1x128xf32> -> vector<2x128xf32>
    %c0_9 = arith.constant 0 : index
    %c0_10 = arith.constant 0 : index
    %c0_11 = arith.constant 0 : index
    %14 = vector.load %arg5[%c0_9, %c0_10, %c0_11] : memref<1x2x128xf32, #tpu.memory_space<vmem>>, vector<1x2x128xf32>
    %15 = vector.shape_cast %14 : vector<1x2x128xf32> to vector<2x128xf32>
    %16 = vector.shape_cast %13 : vector<2x128xf32> to vector<1x2x128xf32>
    tpu.vector_store %arg5[%c0_9, %c0_10, %c0_11], %16 {strides = array<i32>} : memref<1x2x128xf32, #tpu.memory_space<vmem>>, vector<1x2x128xf32>,
    return
  }
  func.func @transform_0(%arg0: i32) -> (i32, i32) {
    %c0_i32 = arith.constant 0 : i32
    %c0_i32_0 = arith.constant 0 : i32
    return %arg0, %c0_i32 : i32, i32
  }
  func.func @transform_1(%arg0: i32) -> (i32, i32) {
    %c0_i32 = arith.constant 0 : i32
    %c0_i32_0 = arith.constant 0 : i32
    %c0_i32_1 = arith.constant 0 : i32
    return %c0_i32, %c0_i32_0 : i32, i32
  }
  func.func @transform_2(%arg0: i32) -> (i32, i32) {
    %c0_i32 = arith.constant 0 : i32
    %c0_i32_0 = arith.constant 0 : i32
    %c0_i32_1 = arith.constant 0 : i32
    return %c0_i32, %c0_i32_0 : i32, i32
  }
  func.func @transform_3(%arg0: i32) -> (i32, i32) {
    %c0_i32 = arith.constant 0 : i32
    %c0_i32_0 = arith.constant 0 : i32
    return %arg0, %c0_i32 : i32, i32
  }
  func.func @transform_4(%arg0: i32) -> (i32, i32, i32) {
    %c0_i32 = arith.constant 0 : i32
    %c0_i32_0 = arith.constant 0 : i32
    %c0_i32_1 = arith.constant 0 : i32
    return %arg0, %c0_i32, %c0_i32_0 : i32, i32, i32
  }
}

module attributes {stable_mosaic.version = 11 : i64} {
  func.func @_convT_stats_kernel(%arg0: i32, %arg1: memref<256x32xbf16, #tpu.memory_space<vmem>>, %arg2: memref<32x128xbf16, #tpu.memory_space<vmem>>, %arg3: memref<1x128xf32, #tpu.memory_space<vmem>>, %arg4: memref<256x128xbf16, #tpu.memory_space<vmem>>, %arg5: memref<1x2x128xf32, #tpu.memory_space<vmem>>) attributes {dimension_semantics = [#tpu.dimension_semantics<parallel>], iteration_bounds = array<i64: 2>, scalar_prefetch = 0 : i64, scratch_operands = 0 : i64, tpu.core_type = #tpu.core_type<tc>, window_params = [{transform_indices = @transform_0, window_bounds = array<i64: 256, 32>}, {pipeline_mode = #tpu.pipeline_mode<synchronous>, transform_indices = @transform_1, window_bounds = array<i64: 32, 128>}, {pipeline_mode = #tpu.pipeline_mode<synchronous>, transform_indices = @transform_2, window_bounds = array<i64: 1, 128>}, {transform_indices = @transform_3, window_bounds = array<i64: 256, 128>}, {transform_indices = @transform_4, window_bounds = array<i64: 1, 2, 128>}]} {
    %c0 = arith.constant 0 : index
    %c0_0 = arith.constant 0 : index
    %0 = vector.load %arg1[%c0, %c0_0] : memref<256x32xbf16, #tpu.memory_space<vmem>>, vector<256x32xbf16>
    %c0_1 = arith.constant 0 : index
    %c0_2 = arith.constant 0 : index
    %1 = vector.load %arg2[%c0_1, %c0_2] : memref<32x128xbf16, #tpu.memory_space<vmem>>, vector<32x128xbf16>
    %cst = arith.constant dense<0.000000e+00> : vector<256x128xf32>
    %2 = tpu.matmul %0, %1, %cst {dimension_numbers = #tpu.dot_dimension_numbers<[1], [0], [0], [1], [0, 0, 1, 1], [], []>} : vector<256x32xbf16>, vector<32x128xbf16>, vector<256x128xf32> -> vector<256x128xf32>
    %c0_3 = arith.constant 0 : index
    %c0_4 = arith.constant 0 : index
    %3 = vector.load %arg3[%c0_3, %c0_4] : memref<1x128xf32, #tpu.memory_space<vmem>>, vector<1x128xf32>
    %4 = vector.broadcast %3 : vector<1x128xf32> to vector<256x128xf32>
    %5 = arith.addf %2, %4 : vector<256x128xf32>
    %6 = arith.truncf %5 : vector<256x128xf32> to vector<256x128xbf16>
    %c0_5 = arith.constant 0 : index
    %c0_6 = arith.constant 0 : index
    %7 = vector.load %arg4[%c0_5, %c0_6] : memref<256x128xbf16, #tpu.memory_space<vmem>>, vector<256x128xbf16>
    tpu.vector_store %arg4[%c0_5, %c0_6], %6 {strides = array<i32>} : memref<256x128xbf16, #tpu.memory_space<vmem>>, vector<256x128xbf16>,
    %cst_7 = arith.constant dense<0.000000e+00> : vector<128xf32>
    %8 = vector.multi_reduction <add>, %5, %cst_7 [0] : vector<256x128xf32> to vector<128xf32>
    %9 = vector.shape_cast %8 : vector<128xf32> to vector<1x128xf32>
    %10 = arith.mulf %5, %5 : vector<256x128xf32>
    %cst_8 = arith.constant dense<0.000000e+00> : vector<128xf32>
    %11 = vector.multi_reduction <add>, %10, %cst_8 [0] : vector<256x128xf32> to vector<128xf32>
    %12 = vector.shape_cast %11 : vector<128xf32> to vector<1x128xf32>
    %13 = tpu.concatenate %9, %12 in 0 : vector<1x128xf32>, vector<1x128xf32> -> vector<2x128xf32>
    %c0_9 = arith.constant 0 : index
    %c0_10 = arith.constant 0 : index
    %c0_11 = arith.constant 0 : index
    %14 = vector.load %arg5[%c0_9, %c0_10, %c0_11] : memref<1x2x128xf32, #tpu.memory_space<vmem>>, vector<1x2x128xf32>
    %15 = vector.shape_cast %14 : vector<1x2x128xf32> to vector<2x128xf32>
    %16 = vector.shape_cast %13 : vector<2x128xf32> to vector<1x2x128xf32>
    tpu.vector_store %arg5[%c0_9, %c0_10, %c0_11], %16 {strides = array<i32>} : memref<1x2x128xf32, #tpu.memory_space<vmem>>, vector<1x2x128xf32>,
    return
  }
  func.func @transform_0(%arg0: i32) -> (i32, i32) {
    %c0_i32 = arith.constant 0 : i32
    %c0_i32_0 = arith.constant 0 : i32
    return %arg0, %c0_i32 : i32, i32
  }
  func.func @transform_1(%arg0: i32) -> (i32, i32) {
    %c0_i32 = arith.constant 0 : i32
    %c0_i32_0 = arith.constant 0 : i32
    %c0_i32_1 = arith.constant 0 : i32
    return %c0_i32, %c0_i32_0 : i32, i32
  }
  func.func @transform_2(%arg0: i32) -> (i32, i32) {
    %c0_i32 = arith.constant 0 : i32
    %c0_i32_0 = arith.constant 0 : i32
    %c0_i32_1 = arith.constant 0 : i32
    return %c0_i32, %c0_i32_0 : i32, i32
  }
  func.func @transform_3(%arg0: i32) -> (i32, i32) {
    %c0_i32 = arith.constant 0 : i32
    %c0_i32_0 = arith.constant 0 : i32
    return %arg0, %c0_i32 : i32, i32
  }
  func.func @transform_4(%arg0: i32) -> (i32, i32, i32) {
    %c0_i32 = arith.constant 0 : i32
    %c0_i32_0 = arith.constant 0 : i32
    %c0_i32_1 = arith.constant 0 : i32
    return %arg0, %c0_i32, %c0_i32_0 : i32, i32, i32
  }
}

module attributes {stable_mosaic.version = 11 : i64} {
  func.func @_convT_kernel(%arg0: i32, %arg1: memref<256x16xbf16, #tpu.memory_space<vmem>>, %arg2: memref<16x128xbf16, #tpu.memory_space<vmem>>, %arg3: memref<1x128xf32, #tpu.memory_space<vmem>>, %arg4: memref<256x128xf32, #tpu.memory_space<vmem>>) attributes {dimension_semantics = [#tpu.dimension_semantics<parallel>], iteration_bounds = array<i64: 8>, scalar_prefetch = 0 : i64, scratch_operands = 0 : i64, tpu.core_type = #tpu.core_type<tc>, window_params = [{transform_indices = @transform_0, window_bounds = array<i64: 256, 16>}, {pipeline_mode = #tpu.pipeline_mode<synchronous>, transform_indices = @transform_1, window_bounds = array<i64: 16, 128>}, {pipeline_mode = #tpu.pipeline_mode<synchronous>, transform_indices = @transform_2, window_bounds = array<i64: 1, 128>}, {transform_indices = @transform_3, window_bounds = array<i64: 256, 128>}]} {
    %c0 = arith.constant 0 : index
    %c0_0 = arith.constant 0 : index
    %0 = vector.load %arg1[%c0, %c0_0] : memref<256x16xbf16, #tpu.memory_space<vmem>>, vector<256x16xbf16>
    %c0_1 = arith.constant 0 : index
    %c0_2 = arith.constant 0 : index
    %1 = vector.load %arg2[%c0_1, %c0_2] : memref<16x128xbf16, #tpu.memory_space<vmem>>, vector<16x128xbf16>
    %cst = arith.constant dense<0.000000e+00> : vector<256x128xf32>
    %2 = tpu.matmul %0, %1, %cst {dimension_numbers = #tpu.dot_dimension_numbers<[1], [0], [0], [1], [0, 0, 1, 1], [], []>} : vector<256x16xbf16>, vector<16x128xbf16>, vector<256x128xf32> -> vector<256x128xf32>
    %c0_3 = arith.constant 0 : index
    %c0_4 = arith.constant 0 : index
    %3 = vector.load %arg3[%c0_3, %c0_4] : memref<1x128xf32, #tpu.memory_space<vmem>>, vector<1x128xf32>
    %4 = vector.broadcast %3 : vector<1x128xf32> to vector<256x128xf32>
    %5 = arith.addf %2, %4 : vector<256x128xf32>
    %6 = math.tanh %5 : vector<256x128xf32>
    %c0_5 = arith.constant 0 : index
    %c0_6 = arith.constant 0 : index
    %7 = vector.load %arg4[%c0_5, %c0_6] : memref<256x128xf32, #tpu.memory_space<vmem>>, vector<256x128xf32>
    tpu.vector_store %arg4[%c0_5, %c0_6], %6 {strides = array<i32>} : memref<256x128xf32, #tpu.memory_space<vmem>>, vector<256x128xf32>,
    return
  }
  func.func @transform_0(%arg0: i32) -> (i32, i32) {
    %c0_i32 = arith.constant 0 : i32
    %c0_i32_0 = arith.constant 0 : i32
    return %arg0, %c0_i32 : i32, i32
  }
  func.func @transform_1(%arg0: i32) -> (i32, i32) {
    %c0_i32 = arith.constant 0 : i32
    %c0_i32_0 = arith.constant 0 : i32
    %c0_i32_1 = arith.constant 0 : i32
    return %c0_i32, %c0_i32_0 : i32, i32
  }
  func.func @transform_2(%arg0: i32) -> (i32, i32) {
    %c0_i32 = arith.constant 0 : i32
    %c0_i32_0 = arith.constant 0 : i32
    %c0_i32_1 = arith.constant 0 : i32
    return %c0_i32, %c0_i32_0 : i32, i32
  }
  func.func @transform_3(%arg0: i32) -> (i32, i32) {
    %c0_i32 = arith.constant 0 : i32
    %c0_i32_0 = arith.constant 0 : i32
    return %arg0, %c0_i32 : i32, i32
  }
}

</mosaic_0001>

<bundles_post_ra>
// kernel: tile.33
= control target key start
LH: loop header
LB: loop body
LE: loop exit
PB: predicated region body
PF: predicated region fallthrough
CT: control target
= control target key end

     0   :  { %2 = vsyncpa [#allocation1], 0  ;;  %s44_s6 = smov [#allocation0]   ;;  %s70_s0 = inlined_call_operand.hbm [shape: f32[64], index: 0, kind: input, shape index: {}]   ;;  %s71_s1 = inlined_call_operand.vmem [shape: f32[4,64], index: 1, kind: output, shape index: {}]  }
   0x1   :  { %s9_s7 = sshll.u32 %s44_s6, 4  ;;  %s20_s10 = scalar_lea.hbm %s70_s0, 16  ;;  %s10_s7 = int_to_ptr.vmem [resolvable:$true] %s9_s7 }
   0x2   :  { %p21_p0 = scmp.ne.s32.totalorder %s70_s0, %s20_s10  ;;  %p24_p1 = scmp.lt.u32.totalorder %s20_s10, %s70_s0 }
   0x4   :  { %p26_p2 = pnand %p24_p1, %p21_p0 }
   0x6   :  { %29 = shalt.err (!%p26_p2)
}
   0x7   :  { %s30_s15 = scalar_lea.vmem %s10_s7, 16  ;;  %s34_s16 = scalar_lea.vmem %s10_s7, 32 }
   0x8   :  { %p31_p3 = scmp.ne.s32.totalorder %s10_s7, %s30_s15  ;;  %p35_p4 = scmp.lt.s32.totalorder %s10_s7, %s10_s7 }
   0x9   :  { %p36_p5 = scmp.lt.s32.totalorder %s34_s16, %s30_s15 }
   0xb   :  { %p37_p6 = por %p36_p5, %p35_p4 }
   0xd   :  { %p38_p7 = pnand %p37_p6, %p31_p3 }
   0xf   :  { %41 = shalt.err (!%p38_p7)
}
  0x10   :  { %12 = dma.hbm_to_vmem [thread:$0]  %s70_s0, 16, %s10_s7, [#allocation1]  }
  0x11   :  { %42 = dma.done.wait [#allocation1], 16  }
  0x12   :  { %43 = vsyncadd [#allocation1], 4294967280  ;;  %v16_v0 = vld [vmem:[#allocation0] ss:$0 sm:$0xff] }
  0x13   :  { %17 = vst [vmem:[%s71_s1] sm:$0xf] %v16_v0 }
  0x14   :  { %18 = vsyncpa [#allocation1], 1 }

// kernel: tile.43
= control target key start
LH: loop header
LB: loop body
LE: loop exit
PB: predicated region body
PF: predicated region fallthrough
CT: control target
= control target key end

     0   :  { %2 = vsyncpa [#allocation1], 0  ;;  %s44_s6 = smov [#allocation0]   ;;  %s70_s0 = inlined_call_operand.hbm [shape: f32[16], index: 0, kind: input, shape index: {}]   ;;  %s71_s1 = inlined_call_operand.vmem [shape: f32[4,16], index: 1, kind: output, shape index: {}]  }
   0x1   :  { %s9_s7 = sshll.u32 %s44_s6, 4  ;;  %s20_s10 = scalar_lea.hbm %s70_s0, 16  ;;  %s10_s7 = int_to_ptr.vmem [resolvable:$true] %s9_s7 }
   0x2   :  { %p21_p0 = scmp.ne.s32.totalorder %s70_s0, %s20_s10  ;;  %p24_p1 = scmp.lt.u32.totalorder %s20_s10, %s70_s0 }
   0x4   :  { %p26_p2 = pnand %p24_p1, %p21_p0 }
   0x6   :  { %29 = shalt.err (!%p26_p2)
}
   0x7   :  { %s30_s15 = scalar_lea.vmem %s10_s7, 16  ;;  %s34_s16 = scalar_lea.vmem %s10_s7, 32 }
   0x8   :  { %p31_p3 = scmp.ne.s32.totalorder %s10_s7, %s30_s15  ;;  %p35_p4 = scmp.lt.s32.totalorder %s10_s7, %s10_s7 }
   0x9   :  { %p36_p5 = scmp.lt.s32.totalorder %s34_s16, %s30_s15 }
   0xb   :  { %p37_p6 = por %p36_p5, %p35_p4 }
   0xd   :  { %p38_p7 = pnand %p37_p6, %p31_p3 }
   0xf   :  { %41 = shalt.err (!%p38_p7)
}
  0x10   :  { %12 = dma.hbm_to_vmem [thread:$0]  %s70_s0, 16, %s10_s7, [#allocation1]  }
  0x11   :  { %42 = dma.done.wait [#allocation1], 16  }
  0x12   :  { %43 = vsyncadd [#allocation1], 4294967280  ;;  %v16_v0 = vld [vmem:[#allocation0] ss:$0 sm:$0xff] }
  0x13   :  { %17 = vst [vmem:[%s71_s1] sm:$0xf] %v16_v0 }
  0x14   :  { %18 = vsyncpa [#allocation1], 1 }

// kernel: tile.38
= control target key start
LH: loop header
LB: loop body
LE: loop exit
PB: predicated region body
PF: predicated region fallthrough
CT: control target
= control target key end

     0   :  { %2 = vsyncpa [#allocation1], 0  ;;  %s44_s6 = smov [#allocation0]   ;;  %s70_s0 = inlined_call_operand.hbm [shape: f32[32], index: 0, kind: input, shape index: {}]   ;;  %s71_s1 = inlined_call_operand.vmem [shape: f32[4,32], index: 1, kind: output, shape index: {}]  }
   0x1   :  { %s9_s7 = sshll.u32 %s44_s6, 4  ;;  %s20_s10 = scalar_lea.hbm %s70_s0, 16  ;;  %s10_s7 = int_to_ptr.vmem [resolvable:$true] %s9_s7 }
   0x2   :  { %p21_p0 = scmp.ne.s32.totalorder %s70_s0, %s20_s10  ;;  %p24_p1 = scmp.lt.u32.totalorder %s20_s10, %s70_s0 }
   0x4   :  { %p26_p2 = pnand %p24_p1, %p21_p0 }
   0x6   :  { %29 = shalt.err (!%p26_p2)
}
   0x7   :  { %s30_s15 = scalar_lea.vmem %s10_s7, 16  ;;  %s34_s16 = scalar_lea.vmem %s10_s7, 32 }
   0x8   :  { %p31_p3 = scmp.ne.s32.totalorder %s10_s7, %s30_s15  ;;  %p35_p4 = scmp.lt.s32.totalorder %s10_s7, %s10_s7 }
   0x9   :  { %p36_p5 = scmp.lt.s32.totalorder %s34_s16, %s30_s15 }
   0xb   :  { %p37_p6 = por %p36_p5, %p35_p4 }
   0xd   :  { %p38_p7 = pnand %p37_p6, %p31_p3 }
   0xf   :  { %41 = shalt.err (!%p38_p7)
}
  0x10   :  { %12 = dma.hbm_to_vmem [thread:$0]  %s70_s0, 16, %s10_s7, [#allocation1]  }
  0x11   :  { %42 = dma.done.wait [#allocation1], 16  }
  0x12   :  { %43 = vsyncadd [#allocation1], 4294967280  ;;  %v16_v0 = vld [vmem:[#allocation0] ss:$0 sm:$0xff] }
  0x13   :  { %17 = vst [vmem:[%s71_s1] sm:$0xf] %v16_v0 }
  0x14   :  { %18 = vsyncpa [#allocation1], 1 }

// kernel: tile.44
= control target key start
LH: loop header
LB: loop body
LE: loop exit
PB: predicated region body
PF: predicated region fallthrough
CT: control target
= control target key end

     0   :  { %vm7_vm0 = vcmask 130048   ;;  %s37_s8 = smov 16   ;;  %s38_s9 = smov 32   ;;  %vm13_vm1 = vcmask 523648   ;;  %vm19_vm2 = vcmask 392448   ;;  %vm25_vm3 = vcmask 261248   ;;  %s55_s0 = inlined_call_operand.vmem [shape: f32[4,16], index: 0, kind: input, shape index: {}]   ;;  %s56_s1 = inlined_call_operand.vmem [shape: f32[64], index: 1, kind: output, shape index: {}]  }
   0x1   :  { %v4_v0 = vld [vmem:[%s55_s0] sm:$0xf]  ;;  %s36_s0 = smov 48  }
   0x2   :  { %5 = vst [vmem:[#allocation1] sm:$0xf] %v4_v0 }
   0x9   :  { %v10_v1 = vld [vmem:[#allocation1 + $0x3] sm:$0x1]   ;;  %v22_v2 = vld [vmem:[#allocation1 + $0x1] sm:$0x1]   ;;  %v6_v3 = vld [vmem:[#allocation1] sm:$0x1]  }
   0xa   :  { %11 = vrot.lane.b32.xlu0 %v10_v1, %s36_s0  ;;  %23 = vrot.lane.b32.xlu1 %v22_v2, %s37_s8  ;;  %v16_v4 = vld [vmem:[#allocation1 + $0x2] sm:$0x1]   ;;  %8 = vst.msk [vmem:[#allocation0] sm:$0x1] %vm7_vm0, %v6_v3  }
   0xe   :  { %17 = vrot.lane.b32.xlu0 %v16_v4, %s38_s9 }
  0x7c   :  { %v12_v5 = vpop.permute.xlu0 %11   ;;  %v24_v6 = vpop.permute.xlu1 %23  }
  0x7d   :  { %14 = vst.msk [vmem:[#allocation0] sm:$0x1] %vm13_vm1, %v12_v5  }
  0x80   :  { %v18_v7 = vpop.permute.xlu0 %17  }
  0x81   :  { %20 = vst.msk [vmem:[#allocation0] sm:$0x1] %vm19_vm2, %v18_v7  }
  0x82   :  { %26 = vst.msk [vmem:[#allocation0] sm:$0x1] %vm25_vm3, %v24_v6  }
  0x89   :  { %v30_v8 = vld [vmem:[#allocation0] sm:$0x1] }
  0x8a   :  { %32 = vst [vmem:[%s56_s1] sm:$0x1] %v30_v8 }

// kernel: tile.48
= control target key start
LH: loop header
LB: loop body
LE: loop exit
PB: predicated region body
PF: predicated region fallthrough
CT: control target
= control target key end

     0   :  { %2 = vsyncpa [#allocation1], 0  ;;  %s44_s6 = smov [#allocation0]   ;;  %s70_s0 = inlined_call_operand.hbm [shape: f32[8], index: 0, kind: input, shape index: {}]   ;;  %s71_s1 = inlined_call_operand.vmem [shape: f32[4,8], index: 1, kind: output, shape index: {}]  }
   0x1   :  { %s9_s7 = sshll.u32 %s44_s6, 4  ;;  %s20_s10 = scalar_lea.hbm %s70_s0, 16  ;;  %s10_s7 = int_to_ptr.vmem [resolvable:$true] %s9_s7 }
   0x2   :  { %p21_p0 = scmp.ne.s32.totalorder %s70_s0, %s20_s10  ;;  %p24_p1 = scmp.lt.u32.totalorder %s20_s10, %s70_s0 }
   0x4   :  { %p26_p2 = pnand %p24_p1, %p21_p0 }
   0x6   :  { %29 = shalt.err (!%p26_p2)
}
   0x7   :  { %s30_s15 = scalar_lea.vmem %s10_s7, 16  ;;  %s34_s16 = scalar_lea.vmem %s10_s7, 32 }
   0x8   :  { %p31_p3 = scmp.ne.s32.totalorder %s10_s7, %s30_s15  ;;  %p35_p4 = scmp.lt.s32.totalorder %s10_s7, %s10_s7 }
   0x9   :  { %p36_p5 = scmp.lt.s32.totalorder %s34_s16, %s30_s15 }
   0xb   :  { %p37_p6 = por %p36_p5, %p35_p4 }
   0xd   :  { %p38_p7 = pnand %p37_p6, %p31_p3 }
   0xf   :  { %41 = shalt.err (!%p38_p7)
}
  0x10   :  { %12 = dma.hbm_to_vmem [thread:$0]  %s70_s0, 16, %s10_s7, [#allocation1]  }
  0x11   :  { %42 = dma.done.wait [#allocation1], 16  }
  0x12   :  { %43 = vsyncadd [#allocation1], 4294967280  ;;  %v16_v0 = vld [vmem:[#allocation0] ss:$0 sm:$0xff] }
  0x13   :  { %17 = vst [vmem:[%s71_s1] sm:$0xf] %v16_v0 }
  0x14   :  { %18 = vsyncpa [#allocation1], 1 }

// kernel: tile.49
= control target key start
LH: loop header
LB: loop body
LE: loop exit
PB: predicated region body
PF: predicated region fallthrough
CT: control target
= control target key end

     0   :  { %vm7_vm0 = vcmask 64512   ;;  %s37_s8 = smov 8   ;;  %s38_s9 = smov 16   ;;  %vm13_vm1 = vcmask 261312   ;;  %vm19_vm2 = vcmask 195712   ;;  %vm25_vm3 = vcmask 130112   ;;  %s55_s0 = inlined_call_operand.vmem [shape: f32[4,8], index: 0, kind: input, shape index: {}]   ;;  %s56_s1 = inlined_call_operand.vmem [shape: f32[32], index: 1, kind: output, shape index: {}]  }
   0x1   :  { %v4_v0 = vld [vmem:[%s55_s0] sm:$0xf]  ;;  %s36_s0 = smov 24  }
   0x2   :  { %5 = vst [vmem:[#allocation1] sm:$0xf] %v4_v0 }
   0x9   :  { %v10_v1 = vld [vmem:[#allocation1 + $0x3] sm:$0x1]   ;;  %v22_v2 = vld [vmem:[#allocation1 + $0x1] sm:$0x1]   ;;  %v6_v3 = vld [vmem:[#allocation1] sm:$0x1]  }
   0xa   :  { %11 = vrot.lane.b32.xlu0 %v10_v1, %s36_s0  ;;  %23 = vrot.lane.b32.xlu1 %v22_v2, %s37_s8  ;;  %v16_v4 = vld [vmem:[#allocation1 + $0x2] sm:$0x1]   ;;  %8 = vst.msk [vmem:[#allocation0] sm:$0x1] %vm7_vm0, %v6_v3  }
   0xe   :  { %17 = vrot.lane.b32.xlu0 %v16_v4, %s38_s9 }
  0x7c   :  { %v12_v5 = vpop.permute.xlu0 %11   ;;  %v24_v6 = vpop.permute.xlu1 %23  }
  0x7d   :  { %14 = vst.msk [vmem:[#allocation0] sm:$0x1] %vm13_vm1, %v12_v5  }
  0x80   :  { %v18_v7 = vpop.permute.xlu0 %17  }
  0x81   :  { %20 = vst.msk [vmem:[#allocation0] sm:$0x1] %vm19_vm2, %v18_v7  }
  0x82   :  { %26 = vst.msk [vmem:[#allocation0] sm:$0x1] %vm25_vm3, %v24_v6  }
  0x89   :  { %v30_v8 = vld [vmem:[#allocation0] sm:$0x1] }
  0x8a   :  { %32 = vst [vmem:[%s56_s1] sm:$0x1] %v30_v8 }

// kernel: tile.53
= control target key start
LH: loop header
LB: loop body
LE: loop exit
PB: predicated region body
PF: predicated region fallthrough
CT: control target
= control target key end

     0   :  { %2 = vsyncpa [#allocation1], 0  ;;  %s44_s6 = smov [#allocation0]   ;;  %s70_s0 = inlined_call_operand.hbm [shape: f32[4], index: 0, kind: input, shape index: {}]   ;;  %s71_s1 = inlined_call_operand.vmem [shape: f32[4,4], index: 1, kind: output, shape index: {}]  }
   0x1   :  { %s9_s7 = sshll.u32 %s44_s6, 4  ;;  %s20_s10 = scalar_lea.hbm %s70_s0, 16  ;;  %s10_s7 = int_to_ptr.vmem [resolvable:$true] %s9_s7 }
   0x2   :  { %p21_p0 = scmp.ne.s32.totalorder %s70_s0, %s20_s10  ;;  %p24_p1 = scmp.lt.u32.totalorder %s20_s10, %s70_s0 }
   0x4   :  { %p26_p2 = pnand %p24_p1, %p21_p0 }
   0x6   :  { %29 = shalt.err (!%p26_p2)
}
   0x7   :  { %s30_s15 = scalar_lea.vmem %s10_s7, 16  ;;  %s34_s16 = scalar_lea.vmem %s10_s7, 32 }
   0x8   :  { %p31_p3 = scmp.ne.s32.totalorder %s10_s7, %s30_s15  ;;  %p35_p4 = scmp.lt.s32.totalorder %s10_s7, %s10_s7 }
   0x9   :  { %p36_p5 = scmp.lt.s32.totalorder %s34_s16, %s30_s15 }
   0xb   :  { %p37_p6 = por %p36_p5, %p35_p4 }
   0xd   :  { %p38_p7 = pnand %p37_p6, %p31_p3 }
   0xf   :  { %41 = shalt.err (!%p38_p7)
}
  0x10   :  { %12 = dma.hbm_to_vmem [thread:$0]  %s70_s0, 16, %s10_s7, [#allocation1]  }
  0x11   :  { %42 = dma.done.wait [#allocation1], 16  }
  0x12   :  { %43 = vsyncadd [#allocation1], 4294967280  ;;  %v16_v0 = vld [vmem:[#allocation0] ss:$0 sm:$0xff] }
  0x13   :  { %17 = vst [vmem:[%s71_s1] sm:$0xf] %v16_v0 }
  0x14   :  { %18 = vsyncpa [#allocation1], 1 }

// kernel: tile.58
= control target key start
LH: loop header
LB: loop body
LE: loop exit
PB: predicated region body
PF: predicated region fallthrough
CT: control target
= control target key end

     0   :  { %2 = vsyncpa [#allocation1], 0  ;;  %s44_s6 = smov [#allocation0]   ;;  %s70_s0 = inlined_call_operand.hbm [shape: f32[3], index: 0, kind: input, shape index: {}]   ;;  %s71_s1 = inlined_call_operand.vmem [shape: f32[4,3], index: 1, kind: output, shape index: {}]  }
   0x1   :  { %s9_s7 = sshll.u32 %s44_s6, 4  ;;  %s20_s10 = scalar_lea.hbm %s70_s0, 16  ;;  %s10_s7 = int_to_ptr.vmem [resolvable:$true] %s9_s7 }
   0x2   :  { %p21_p0 = scmp.ne.s32.totalorder %s70_s0, %s20_s10  ;;  %p24_p1 = scmp.lt.u32.totalorder %s20_s10, %s70_s0 }
   0x4   :  { %p26_p2 = pnand %p24_p1, %p21_p0 }
   0x6   :  { %29 = shalt.err (!%p26_p2)
}
   0x7   :  { %s30_s15 = scalar_lea.vmem %s10_s7, 16  ;;  %s34_s16 = scalar_lea.vmem %s10_s7, 32 }
   0x8   :  { %p31_p3 = scmp.ne.s32.totalorder %s10_s7, %s30_s15  ;;  %p35_p4 = scmp.lt.s32.totalorder %s10_s7, %s10_s7 }
   0x9   :  { %p36_p5 = scmp.lt.s32.totalorder %s34_s16, %s30_s15 }
   0xb   :  { %p37_p6 = por %p36_p5, %p35_p4 }
   0xd   :  { %p38_p7 = pnand %p37_p6, %p31_p3 }
   0xf   :  { %41 = shalt.err (!%p38_p7)
}
  0x10   :  { %12 = dma.hbm_to_vmem [thread:$0]  %s70_s0, 16, %s10_s7, [#allocation1]  }
  0x11   :  { %42 = dma.done.wait [#allocation1], 16  }
  0x12   :  { %43 = vsyncadd [#allocation1], 4294967280  ;;  %v16_v0 = vld [vmem:[#allocation0] ss:$0 sm:$0xff] }
  0x13   :  { %17 = vst [vmem:[%s71_s1] sm:$0xf] %v16_v0 }
  0x14   :  { %18 = vsyncpa [#allocation1], 1 }

// kernel: tile.54
= control target key start
LH: loop header
LB: loop body
LE: loop exit
PB: predicated region body
PF: predicated region fallthrough
CT: control target
= control target key end

     0   :  { %vm7_vm0 = vcmask 31744   ;;  %s37_s8 = smov 4   ;;  %s38_s9 = smov 8   ;;  %vm13_vm1 = vcmask 130144   ;;  %vm19_vm2 = vcmask 97344   ;;  %vm25_vm3 = vcmask 64544   ;;  %s55_s0 = inlined_call_operand.vmem [shape: f32[4,4], index: 0, kind: input, shape index: {}]   ;;  %s56_s1 = inlined_call_operand.vmem [shape: f32[16], index: 1, kind: output, shape index: {}]  }
   0x1   :  { %v4_v0 = vld [vmem:[%s55_s0] sm:$0xf]  ;;  %s36_s0 = smov 12  }
   0x2   :  { %5 = vst [vmem:[#allocation1] sm:$0xf] %v4_v0 }
   0x9   :  { %v10_v1 = vld [vmem:[#allocation1 + $0x3] sm:$0x1]   ;;  %v22_v2 = vld [vmem:[#allocation1 + $0x1] sm:$0x1]   ;;  %v6_v3 = vld [vmem:[#allocation1] sm:$0x1]  }
   0xa   :  { %11 = vrot.lane.b32.xlu0 %v10_v1, %s36_s0  ;;  %23 = vrot.lane.b32.xlu1 %v22_v2, %s37_s8  ;;  %v16_v4 = vld [vmem:[#allocation1 + $0x2] sm:$0x1]   ;;  %8 = vst.msk [vmem:[#allocation0] sm:$0x1] %vm7_vm0, %v6_v3  }
   0xe   :  { %17 = vrot.lane.b32.xlu0 %v16_v4, %s38_s9 }
  0x7c   :  { %v12_v5 = vpop.permute.xlu0 %11   ;;  %v24_v6 = vpop.permute.xlu1 %23  }
  0x7d   :  { %14 = vst.msk [vmem:[#allocation0] sm:$0x1] %vm13_vm1, %v12_v5  }
  0x80   :  { %v18_v7 = vpop.permute.xlu0 %17  }
  0x81   :  { %20 = vst.msk [vmem:[#allocation0] sm:$0x1] %vm19_vm2, %v18_v7  }
  0x82   :  { %26 = vst.msk [vmem:[#allocation0] sm:$0x1] %vm25_vm3, %v24_v6  }
  0x89   :  { %v30_v8 = vld [vmem:[#allocation0] sm:$0x1] }
  0x8a   :  { %32 = vst [vmem:[%s56_s1] sm:$0x1] %v30_v8 }

// kernel: tile.59
= control target key start
LH: loop header
LB: loop body
LE: loop exit
PB: predicated region body
PF: predicated region fallthrough
CT: control target
= control target key end

     0   :  { %vm7_vm0 = vcmask 23552   ;;  %s37_s8 = smov 3   ;;  %s38_s9 = smov 6   ;;  %vm13_vm1 = vcmask 97352   ;;  %vm19_vm2 = vcmask 72752   ;;  %vm25_vm3 = vcmask 48152   ;;  %s55_s0 = inlined_call_operand.vmem [shape: f32[4,3], index: 0, kind: input, shape index: {}]   ;;  %s56_s1 = inlined_call_operand.vmem [shape: f32[12], index: 1, kind: output, shape index: {}]  }
   0x1   :  { %v4_v0 = vld [vmem:[%s55_s0] sm:$0xf]  ;;  %s36_s0 = smov 9  }
   0x2   :  { %5 = vst [vmem:[#allocation1] sm:$0xf] %v4_v0 }
   0x9   :  { %v10_v1 = vld [vmem:[#allocation1 + $0x3] sm:$0x1]   ;;  %v22_v2 = vld [vmem:[#allocation1 + $0x1] sm:$0x1]   ;;  %v6_v3 = vld [vmem:[#allocation1] sm:$0x1]  }
   0xa   :  { %11 = vrot.lane.b32.xlu0 %v10_v1, %s36_s0  ;;  %23 = vrot.lane.b32.xlu1 %v22_v2, %s37_s8  ;;  %v16_v4 = vld [vmem:[#allocation1 + $0x2] sm:$0x1]   ;;  %8 = vst.msk [vmem:[#allocation0] sm:$0x1] %vm7_vm0, %v6_v3  }
   0xe   :  { %17 = vrot.lane.b32.xlu0 %v16_v4, %s38_s9 }
  0x7c   :  { %v12_v5 = vpop.permute.xlu0 %11   ;;  %v24_v6 = vpop.permute.xlu1 %23  }
  0x7d   :  { %14 = vst.msk [vmem:[#allocation0] sm:$0x1] %vm13_vm1, %v12_v5  }
  0x80   :  { %v18_v7 = vpop.permute.xlu0 %17  }
  0x81   :  { %20 = vst.msk [vmem:[#allocation0] sm:$0x1] %vm19_vm2, %v18_v7  }
  0x82   :  { %26 = vst.msk [vmem:[#allocation0] sm:$0x1] %vm25_vm3, %v24_v6  }
  0x89   :  { %v30_v8 = vld [vmem:[#allocation0] sm:$0x1] }
  0x8a   :  { %32 = vst [vmem:[%s56_s1] sm:$0x1] %v30_v8 }

// kernel: conv_forward.6
= control target key start
LH: loop header
LB: loop body
LE: loop exit
PB: predicated region body
PF: predicated region fallthrough
CT: control target
= control target key end

     0   :  { %v126_v1 = vmov 0   ;;  %vm40_vm0 = vcmask 130048   ;;  %v20_v4 = vlaneseq  ;;  %v127_v10 = vmov 1966171168   ;;  %s163_s1 = inlined_call_operand.vmem [shape: bf16[16,256], index: 1, kind: input, shape index: {}]   ;;  %s164_s0 = inlined_call_operand.vmem [shape: bf16[2,16], index: 0, kind: input, shape index: {}]   ;;  %s165_s2 = inlined_call_operand.vmem [shape: f32[1,256], index: 2, kind: input, shape index: {}]   ;;  %s166_s3 = inlined_call_operand.vmem [shape: bf16[2,256], index: 3, kind: output, shape index: {}]  }
   0x1   :  { %v123_v0 = vld [vmem:[%s163_s1 + $0x4] ss:$8 sps:$4 sm:$0xff]   ;;  %76 = vmatprep.mubr.bf16.mxu0 %v126_v1  ;;  %v125_v2 = vld [vmem:[%s163_s1] ss:$8 sps:$4 sm:$0xff]   ;;  %v97_v11 = vunpack.c.l.s4 %v127_v10 }
   0x2   :  { %44 = vmatprep.subr.bf16.mxu0 %v123_v0  ;;  %v15_v3 = vld [vmem:[%s164_s0] sm:$0x1]  ;;  %v21_v5 = vshrl.u32 %v20_v4, 7 }
   0x3   :  { %45 = vmatpush1.bf16.msra.mxu0 %v125_v2  ;;  %v18_v7 = vld [vmem:[%s165_s2] sm:$0x3]  ;;  %v98_v16 = vunpack.c.0.s8 %v97_v11 }
   0x4   :  { %v22_v6 = vsub.s32 0, %v21_v5  ;;  %v26_v8 = vsub.s32 1, %v21_v5 }
   0x5   :  { %v101_v23 = vsub.s32 %v98_v16, %v21_v5 }
   0x6   :  { %118 = vmatmul.mubr.msk.bf16.vlgmr.msra.gmra.mrb[0].mxu0 %vm40_vm0, %v15_v3  ;;  %v23_v9 = vrot.slane %v18_v7, %v22_v6  ;;  %v27_v12 = vrot.slane %v18_v7, %v26_v8 }
  0xd9   :  { %v78_v13 = vpop.f32.mrb[0].mxu0 }
  0xda   :  { %v79_v14 = vadd.f32 %v78_v13, %v23_v9  ;;  %v80_v15 = vpop.f32.mrb[1].mxu0 }
  0xdb   :  { %v81_v17 = vadd.f32 %v80_v15, %v27_v12  ;;  %v82_v18 = vpop.f32.mrb[2].mxu0 }
  0xdc   :  { %vm85_vm1 = vcmp.ge.f32.partialorder %v79_v14, 0.0  ;;  %v87_v19 = vmul.f32 0.2, %v79_v14  ;;  %v83_v20 = vpop.f32.mrb[3].mxu0 }
  0xdd   :  { %vm86_vm2 = vcmp.ge.f32.partialorder %v81_v17, 0.0  ;;  %v88_v21 = vmul.f32 0.2, %v81_v17 }
  0xde   :  { %v89_v22 = vsel %vm85_vm1, %v79_v14, %v87_v19 }
  0xdf   :  { %v90_v24 = vsel %vm86_vm2, %v81_v17, %v88_v21 }
  0xe0   :  { %v119_v25 = vpack.c.bf16 %v90_v24, %v89_v22 }
  0xe2   :  { %v102_v26 = vrot.slane %v119_v25, %v101_v23 }
  0xe4   :  { %120 = vst.sshfl [vmem:[%s166_s3] sm:$0x5 pattern:$0x73625140] %v102_v26 }

// kernel: conv_forward.7
= control target key start
LH: loop header
LB: loop body
LE: loop exit
PB: predicated region body
PF: predicated region fallthrough
CT: control target
= control target key end

     0   :  { %s343_s1 = inlined_call_operand.vmem [shape: bf16[256,128], index: 1, kind: input, shape index: {}]   ;;  %s344_s0 = inlined_call_operand.vmem [shape: bf16[8,256], index: 0, kind: input, shape index: {}]   ;;  %s345_s2 = inlined_call_operand.vmem [shape: f32[1,128], index: 2, kind: input, shape index: {}]   ;;  %s346_s3 = inlined_call_operand.vmem [shape: bf16[8,128], index: 3, kind: output, shape index: {}]  }
   0x1   :  { %v248_v0 = vld [vmem:[%s343_s1 + $0x40] sm:$0xff]   ;;  %v250_v2 = vld [vmem:[%s343_s1 + $0x48] sm:$0xff]   ;;  %v252_v4 = vld [vmem:[%s343_s1 + $0x50] sm:$0xff]  }
   0x2   :  { %v249_v1 = vld [vmem:[%s343_s1] sm:$0xff]   ;;  %226 = vmatprep.subr.bf16.mxu0 %v248_v0  ;;  %v251_v3 = vld [vmem:[%s343_s1 + $0x8] sm:$0xff]   ;;  %v253_v5 = vld [vmem:[%s343_s1 + $0x10] sm:$0xff]  }
   0x3   :  { %227 = vmatpush3.bf16.msra.mxu0 %v249_v1  ;;  %v254_v6 = vld [vmem:[%s343_s1 + $0x58] sm:$0xff]   ;;  %v256_v8 = vld [vmem:[%s343_s1 + $0x60] sm:$0xff]   ;;  %v258_v10 = vld [vmem:[%s343_s1 + $0x68] sm:$0xff]  }
   0x4   :  { %228 = vmatprep.subr.bf16.mxu0 %v250_v2  ;;  %v255_v7 = vld [vmem:[%s343_s1 + $0x18] sm:$0xff]   ;;  %v257_v9 = vld [vmem:[%s343_s1 + $0x20] sm:$0xff]   ;;  %v259_v13 = vld [vmem:[%s343_s1 + $0x28] sm:$0xff]  }
   0x5   :  { %v15_v11 = vld [vmem:[%s344_s0] sm:$0xff]  ;;  %v260_v14 = vld [vmem:[%s343_s1 + $0x70] sm:$0xff]   ;;  %v262_v16 = vld [vmem:[%s343_s1 + $0x78] sm:$0xff]  }
   0x6   :  { %v209_v12 = vcombine.high %v15_v11, %v15_v11  ;;  %v261_v15 = vld [vmem:[%s343_s1 + $0x30] sm:$0xff]   ;;  %v263_v17 = vld [vmem:[%s343_s1 + $0x38] sm:$0xff]   ;;  %v208_v18 = vcombine.low %v15_v11, %v15_v11  ;;  %v207_v20 = vld [vmem:[%s345_s2] ss:$0 sm:$0xff] }
   0x7   :  { %229 = vmatpush3.bf16.msra.mxu0 %v251_v3 }
   0x8   :  { %230 = vmatprep.subr.bf16.mxu0 %v252_v4  ;;  %190 = vmatprep.mubr.bf16.mxu0 %v209_v12 }
   0xb   :  { %231 = vmatpush3.bf16.msra.mxu0 %v253_v5 }
   0xc   :  { %232 = vmatprep.subr.bf16.mxu0 %v254_v6 }
   0xf   :  { %233 = vmatpush3.bf16.msra.mxu0 %v255_v7 }
  0x10   :  { %234 = vmatprep.subr.bf16.mxu0 %v256_v8 }
  0x13   :  { %235 = vmatpush3.bf16.msra.mxu0 %v257_v9 }
  0x14   :  { %236 = vmatprep.subr.bf16.mxu0 %v258_v10 }
  0x17   :  { %237 = vmatpush3.bf16.msra.mxu0 %v259_v13 }
  0x18   :  { %238 = vmatprep.subr.bf16.mxu0 %v260_v14 }
  0x1b   :  { %239 = vmatpush3.bf16.msra.mxu0 %v261_v15 }
  0x1c   :  { %240 = vmatprep.subr.bf16.mxu0 %v262_v16 }
  0x1f   :  { %241 = vmatpush3.bf16.msra.mxu0 %v263_v17 }
  0x22   :  { %191 = vmatmul.mubr.bf16.vlgmr.msra.gmra.mrb[0].mxu0 %v208_v18 }
  0xf5   :  { %v242_v19 = vpop.f32.mrb[0].mxu0 }
  0xf6   :  { %v243_v21 = vpop.f32.mrb[1].mxu0 }
  0xf7   :  { %v244_v22 = vadd.f32 %v243_v21, %v242_v19  ;;  %v245_v23 = vpop.f32.mrb[2].mxu0 }
  0xf8   :  { %v246_v24 = vpop.f32.mrb[3].mxu0 }
  0xf9   :  { %v193_v25 = vadd.f32 %v244_v22, %v207_v20 }
  0xfb   :  { %vm198_vm0 = vcmp.ge.f32.partialorder %v193_v25, 0.0  ;;  %v199_v26 = vmul.f32 0.2, %v193_v25 }
  0xfd   :  { %v200_v27 = vsel %vm198_vm0, %v193_v25, %v199_v26 }
  0xfe   :  { %v201_v28 = vpack.c.bf16 %v200_v27, %v200_v27 }
 0x100   :  { %202 = vst [vmem:[%s346_s3] sm:$0xf] %v201_v28 }

// kernel: conv_forward.8
= control target key start
LH: loop header
LB: loop body
LE: loop exit
PB: predicated region body
PF: predicated region fallthrough
CT: control target
= control target key end

     0   :  { %s316_s1 = inlined_call_operand.vmem [shape: bf16[128,128], index: 1, kind: input, shape index: {}]   ;;  %s317_s0 = inlined_call_operand.vmem [shape: bf16[32,128], index: 0, kind: input, shape index: {}]   ;;  %s318_s2 = inlined_call_operand.vmem [shape: f32[1,128], index: 2, kind: input, shape index: {}]   ;;  %s319_s3 = inlined_call_operand.vmem [shape: bf16[32,128], index: 3, kind: output, shape index: {}]  }
   0x1   :  { %v247_v0 = vld [vmem:[%s316_s1] sm:$0xff]   ;;  %v248_v1 = vld [vmem:[%s316_s1 + $0x8] sm:$0xff]   ;;  %v249_v2 = vld [vmem:[%s316_s1 + $0x10] sm:$0xff]  }
   0x2   :  { %227 = vmatprep.subr.bf16.mxu0 %v247_v0  ;;  %v250_v3 = vld [vmem:[%s316_s1 + $0x18] sm:$0xff]   ;;  %v255_v4 = vld [vmem:[%s317_s0] sm:$0xff]   ;;  %v252_v6 = vld [vmem:[%s316_s1 + $0x28] sm:$0xff]  }
   0x3   :  { %228 = vmatpush3.bf16.msra.mxu0 %v247_v0  ;;  %243 = vmatprep.mubr.bf16.mxu0 %v255_v4  ;;  %v251_v5 = vld [vmem:[%s316_s1 + $0x20] sm:$0xff]   ;;  %v253_v7 = vld [vmem:[%s316_s1 + $0x30] sm:$0xff]   ;;  %v254_v8 = vld [vmem:[%s316_s1 + $0x38] sm:$0xff]  }
   0x4   :  { %229 = vmatprep.subr.bf16.mxu0 %v248_v1  ;;  %v256_v9 = vld [vmem:[%s317_s0 + $0x8] sm:$0xff]   ;;  %v187_v10 = vld [vmem:[%s318_s2] ss:$0 sm:$0xff] }
   0x7   :  { %230 = vmatpush3.bf16.msra.mxu0 %v248_v1 }
   0x8   :  { %231 = vmatprep.subr.bf16.mxu0 %v249_v2 }
   0xb   :  { %232 = vmatpush3.bf16.msra.mxu0 %v249_v2 }
   0xc   :  { %233 = vmatprep.subr.bf16.mxu0 %v250_v3 }
   0xf   :  { %234 = vmatpush3.bf16.msra.mxu0 %v250_v3 }
  0x10   :  { %235 = vmatprep.subr.bf16.mxu0 %v251_v5 }
  0x13   :  { %236 = vmatpush3.bf16.msra.mxu0 %v251_v5 }
  0x14   :  { %237 = vmatprep.subr.bf16.mxu0 %v252_v6 }
  0x17   :  { %238 = vmatpush3.bf16.msra.mxu0 %v252_v6 }
  0x18   :  { %239 = vmatprep.subr.bf16.mxu0 %v253_v7 }
  0x1b   :  { %240 = vmatpush3.bf16.msra.mxu0 %v253_v7 }
  0x1c   :  { %241 = vmatprep.subr.bf16.mxu0 %v254_v8 }
  0x1f   :  { %242 = vmatpush3.bf16.msra.mxu0 %v254_v8 }
  0x22   :  { %244 = vmatmul.mubr.bf16.vlgmr.msra.gmra.mrb[0].mxu0 %v256_v9 }
  0xf5   :  { %v245_v11 = vpop.f32.mrb[0].mxu0 }
  0xf6   :  { %v145_v12 = vadd.f32 %v245_v11, %v187_v10  ;;  %v136_v13 = vpop.f32.mrb[1].mxu0 }
  0xf7   :  { %v137_v14 = vadd.f32 %v187_v10, %v136_v13  ;;  %v246_v15 = vpop.f32.mrb[2].mxu0 }
  0xf8   :  { %v157_v16 = vmul.f32 0.2, %v145_v12  ;;  %v148_v17 = vadd.f32 %v246_v15, %v187_v10  ;;  %v139_v18 = vpop.f32.mrb[3].mxu0  ;;  %vm153_vm0 = vcmp.ge.f32.partialorder %v145_v12, 0.0 }
  0xf9   :  { %v155_v19 = vmul.f32 0.2, %v137_v14  ;;  %v140_v20 = vadd.f32 %v187_v10, %v139_v18  ;;  %vm151_vm1 = vcmp.ge.f32.partialorder %v137_v14, 0.0 }
  0xfa   :  { %vm154_vm2 = vcmp.ge.f32.partialorder %v148_v17, 0.0  ;;  %v158_v21 = vmul.f32 0.2, %v148_v17  ;;  %v161_v23 = vsel %vm153_vm0, %v145_v12, %v157_v16 }
  0xfb   :  { %vm152_vm3 = vcmp.ge.f32.partialorder %v140_v20, 0.0  ;;  %v156_v22 = vmul.f32 0.2, %v140_v20  ;;  %v159_v25 = vsel %vm151_vm1, %v137_v14, %v155_v19 }
  0xfc   :  { %v162_v24 = vsel %vm154_vm2, %v148_v17, %v158_v21 }
  0xfd   :  { %v214_v26 = vpack.c.bf16 %v162_v24, %v161_v23  ;;  %v160_v27 = vsel %vm152_vm3, %v140_v20, %v156_v22 }
  0xfe   :  { %v209_v28 = vpack.c.bf16 %v160_v27, %v159_v25 }
  0xff   :  { %216 = vst [vmem:[%s319_s3 + $0x8] sm:$0xff] %v214_v26  }
 0x100   :  { %210 = vst [vmem:[%s319_s3] sm:$0xff] %v209_v28  }

// kernel: squeeze.94
= control target key start
LH: loop header
LB: loop body
LE: loop exit
PB: predicated region body
PF: predicated region fallthrough
CT: control target
= control target key end

     0   :  { %s37_s8 = smov 104   ;;  %vm7_vm0 = vcmask 64512   ;;  %s38_s9 = smov 112   ;;  %s55_s0 = inlined_call_operand.vmem [shape: f32[32], index: 0, kind: input, shape index: {}]   ;;  %s56_s1 = inlined_call_operand.vmem [shape: f32[4,8], index: 1, kind: output, shape index: {}]  }
   0x1   :  { %v4_v0 = vld [vmem:[%s55_s0] sm:$0x1]  ;;  %s36_s0 = smov 120  }
   0x2   :  { %5 = vst [vmem:[#allocation1] sm:$0x1] %v4_v0 }
   0x9   :  { %v9_v1 = vld [vmem:[#allocation1] sm:$0x1]  }
   0xa   :  { %v21_v2 = vld [vmem:[#allocation1] sm:$0x1]   ;;  %10 = vrot.lane.b32.xlu0 %v9_v1, %s36_s0 }
   0xb   :  { %22 = vrot.lane.b32.xlu1 %v21_v2, %s37_s8  ;;  %v6_v3 = vld [vmem:[#allocation1] sm:$0x1]  }
   0xc   :  { %v15_v4 = vld [vmem:[#allocation1] sm:$0x1]   ;;  %8 = vst.msk [vmem:[#allocation0] sm:$0x1] %vm7_vm0, %v6_v3  }
   0xe   :  { %16 = vrot.lane.b32.xlu0 %v15_v4, %s38_s9 }
  0x7c   :  { %v11_v5 = vpop.permute.xlu0 %10  }
  0x7d   :  { %v23_v6 = vpop.permute.xlu1 %22   ;;  %14 = vst.msk [vmem:[#allocation0 + $0x1] sm:$0x1] %vm7_vm0, %v11_v5  }
  0x7e   :  { %26 = vst.msk [vmem:[#allocation0 + $0x3] sm:$0x1] %vm7_vm0, %v23_v6  }
  0x80   :  { %v17_v7 = vpop.permute.xlu0 %16  }
  0x81   :  { %20 = vst.msk [vmem:[#allocation0 + $0x2] sm:$0x1] %vm7_vm0, %v17_v7  }
  0x88   :  { %v30_v8 = vld [vmem:[#allocation0] sm:$0xf] }
  0x89   :  { %32 = vst [vmem:[%s56_s1] sm:$0xf] %v30_v8 }

// kernel: conv_forward.9
= control target key start
LH: loop header
LB: loop body
LE: loop exit
PB: predicated region body
PF: predicated region fallthrough
CT: control target
= control target key end

     0   :  { %vm112_vm0 = vcmask 523264   ;;  %vm372_vm1 = vcmask 1040384   ;;  %s656_s1 = inlined_call_operand.vmem [shape: bf16[64,128], index: 1, kind: input, shape index: {}]   ;;  %s657_s0 = inlined_call_operand.vmem [shape: bf16[128,64], index: 0, kind: input, shape index: {}]   ;;  %s658_s2 = inlined_call_operand.vmem [shape: f32[1,128], index: 2, kind: input, shape index: {}]   ;;  %s659_s3 = inlined_call_operand.vmem [shape: bf16[128,128], index: 3, kind: output, shape index: {0}]   ;;  %s660_s4 = inlined_call_operand.vmem [shape: f32[1,2,128], index: 4, kind: output, shape index: {1}]  }
   0x1   :  { %v527_v0 = vld [vmem:[%s656_s1] sm:$0xff]   ;;  %v528_v1 = vld [vmem:[%s656_s1 + $0x8] sm:$0xff]   ;;  %v529_v2 = vld [vmem:[%s656_s1 + $0x10] sm:$0xff]  }
   0x2   :  { %495 = vmatprep.subr.bf16.mxu0 %v527_v0  ;;  %519 = vmatprep.subr.bf16.mxu1 %v527_v0  ;;  %v531_v3 = vld [vmem:[%s657_s0] sm:$0xff]   ;;  %v530_v4 = vld [vmem:[%s656_s1 + $0x18] sm:$0xff]   ;;  %v532_v6 = vld [vmem:[%s657_s0 + $0x8] sm:$0xff]  }
   0x3   :  { %496 = vmatpush3.bf16.msra.mxu0 %v527_v0  ;;  %523 = vmatpush3.bf16.msra.mxu1 %v527_v0  ;;  %v535_v5 = vld [vmem:[%s657_s0 + $0x20] sm:$0xff]   ;;  %v536_v7 = vld [vmem:[%s657_s0 + $0x28] sm:$0xff]   ;;  %v533_v8 = vld [vmem:[%s657_s0 + $0x10] sm:$0xff]  }
   0x4   :  { %497 = vmatprep.subr.bf16.mxu0 %v528_v1  ;;  %520 = vmatprep.subr.bf16.mxu1 %v528_v1  ;;  %v537_v9 = vld [vmem:[%s657_s0 + $0x30] sm:$0xff]   ;;  %v534_v10 = vld [vmem:[%s657_s0 + $0x18] sm:$0xff]   ;;  %v383_v12 = vld [vmem:[%s658_s2] ss:$0 sm:$0xff] }
   0x5   :  { %503 = vmatprep.mubr.msk.bf16.mxu0 %vm112_vm0, %v531_v3  ;;  %511 = vmatprep.mubr.msk.bf16.mxu1 %vm112_vm0, %v535_v5  ;;  %v538_v11 = vld [vmem:[%s657_s0 + $0x38] sm:$0xff]  }
   0x7   :  { %498 = vmatpush3.bf16.msra.mxu0 %v528_v1  ;;  %524 = vmatpush3.bf16.msra.mxu1 %v528_v1 }
   0x8   :  { %499 = vmatprep.subr.bf16.mxu0 %v529_v2  ;;  %521 = vmatprep.subr.bf16.mxu1 %v529_v2 }
   0xb   :  { %500 = vmatpush3.bf16.msra.mxu0 %v529_v2  ;;  %525 = vmatpush3.bf16.msra.mxu1 %v529_v2 }
   0xc   :  { %501 = vmatprep.subr.bf16.mxu0 %v530_v4  ;;  %522 = vmatprep.subr.bf16.mxu1 %v530_v4 }
   0xf   :  { %502 = vmatpush3.bf16.msra.mxu0 %v530_v4  ;;  %526 = vmatpush3.bf16.msra.mxu1 %v530_v4 }
  0x12   :  { %504 = vmatmul.mubr.msk.bf16.vlgmr.msra.gmra.mrb[0].mxu0 %vm112_vm0, %v532_v6  ;;  %512 = vmatmul.mubr.msk.bf16.vlgmr.msra.gmra.mrb[0].mxu1 %vm112_vm0, %v536_v7 }
  0x13   :  { %507 = vmatprep.mubr.msk.bf16.mxu0 %vm112_vm0, %v533_v8  ;;  %515 = vmatprep.mubr.msk.bf16.mxu1 %vm112_vm0, %v537_v9 }
  0x1a   :  { %508 = vmatmul.mubr.msk.bf16.gmra.mrb[4].mxu0 %vm112_vm0, %v534_v10  ;;  %516 = vmatmul.mubr.msk.bf16.gmra.mrb[4].mxu1 %vm112_vm0, %v538_v11 }
  0xe5   :  { %v505_v13 = vpop.f32.mrb[0].mxu0  ;;  %v513_v14 = vpop.f32.mrb[0].mxu1 }
  0xe6   :  { %v171_v15 = vpop.f32.mrb[1].mxu0  ;;  %v611_v16 = vadd.f32 %v513_v14, %v383_v12  ;;  %v203_v17 = vpop.f32.mrb[1].mxu1  ;;  %v180_v22 = vadd.f32 %v505_v13, %v383_v12 }
  0xe7   :  { %v172_v18 = vadd.f32 %v383_v12, %v171_v15  ;;  %v506_v19 = vpop.f32.mrb[2].mxu0  ;;  %v613_v20 = vadd.f32 %v383_v12, %v203_v17  ;;  %v514_v21 = vpop.f32.mrb[2].mxu1 }
  0xe8   :  { %v183_v23 = vadd.f32 %v506_v19, %v383_v12  ;;  %v174_v24 = vpop.f32.mrb[3].mxu0  ;;  %v615_v25 = vadd.f32 %v514_v21, %v383_v12  ;;  %v206_v26 = vpop.f32.mrb[3].mxu1  ;;  %v337_v36 = vmul.f32 %v180_v22, %v180_v22  ;;  %v345_v17 = vmul.f32 %v611_v16, %v611_v16 }
  0xe9   :  { %v175_v27 = vadd.f32 %v383_v12, %v174_v24  ;;  %v207_v28 = vadd.f32 %v383_v12, %v206_v26  ;;  %v335_v29 = vmul.f32 %v172_v18, %v172_v18  ;;  %v343_v10 = vmul.f32 %v613_v20, %v613_v20 }
  0xea   :  { %v444_v30 = vpack.c.bf16 %v183_v23, %v180_v22  ;;  %v464_v31 = vpack.c.bf16 %v615_v25, %v611_v16  ;;  %v338_v44 = vmul.f32 %v183_v23, %v183_v23  ;;  %v346_v21 = vmul.f32 %v615_v25, %v615_v25 }
  0xeb   :  { %v439_v32 = vpack.c.bf16 %v175_v27, %v172_v18  ;;  %v314_v33 = vadd.f32 %v175_v27, %v172_v18  ;;  %v336_v34 = vmul.f32 %v175_v27, %v175_v27  ;;  %v459_v35 = vpack.c.bf16 %v207_v28, %v613_v20 }
  0xec   :  { %476 = vst [vmem:[%s659_s3 + $0x8] sm:$0xff] %v444_v30   ;;  %480 = vst [vmem:[%s659_s3 + $0x28] sm:$0xff] %v464_v31   ;;  %v344_v15 = vmul.f32 %v207_v28, %v207_v28 }
  0xed   :  { %440 = vst [vmem:[%s659_s3] sm:$0xff] %v439_v32   ;;  %v315_v37 = vadd.f32 %v314_v33, %v180_v22  ;;  %v351_v38 = vadd.f32 %v336_v34, %v335_v29  ;;  %v509_v39 = vpop.f32.mrb[4].mxu0  ;;  %479 = vst [vmem:[%s659_s3 + $0x20] sm:$0xff] %v459_v35   ;;  %v517_v40 = vpop.f32.mrb[4].mxu1 }
  0xee   :  { %v187_v41 = vpop.f32.mrb[5].mxu0  ;;  %v228_v42 = vadd.f32 %v517_v40, %v383_v12  ;;  %v219_v43 = vpop.f32.mrb[5].mxu1  ;;  %v196_v50 = vadd.f32 %v509_v39, %v383_v12 }
  0xef   :  { %v352_v45 = vadd.f32 %v351_v38, %v337_v36  ;;  %v188_v46 = vadd.f32 %v383_v12, %v187_v41  ;;  %v316_v47 = vadd.f32 %v315_v37, %v183_v23  ;;  %v510_v48 = vpop.f32.mrb[6].mxu0  ;;  %v518_v49 = vpop.f32.mrb[6].mxu1  ;;  %v220_v60 = vadd.f32 %v383_v12, %v219_v43 }
  0xf0   :  { %v199_v51 = vadd.f32 %v510_v48, %v383_v12  ;;  %v190_v52 = vpop.f32.mrb[7].mxu0  ;;  %v231_v53 = vadd.f32 %v518_v49, %v383_v12  ;;  %v222_v54 = vpop.f32.mrb[7].mxu1  ;;  %v341_v3 = vmul.f32 %v196_v50, %v196_v50  ;;  %v349_v31 = vmul.f32 %v228_v42, %v228_v42 }
  0xf1   :  { %v317_v55 = vadd.f32 %v316_v47, %v188_v46  ;;  %v339_v56 = vmul.f32 %v188_v46, %v188_v46  ;;  %v353_v57 = vadd.f32 %v352_v45, %v338_v44  ;;  %v191_v58 = vadd.f32 %v383_v12, %v190_v52 }
  0xf2   :  { %v454_v59 = vpack.c.bf16 %v199_v51, %v196_v50  ;;  %v474_v61 = vpack.c.bf16 %v231_v53, %v228_v42  ;;  %v223_v2 = vadd.f32 %v383_v12, %v222_v54  ;;  %v342_v7 = vmul.f32 %v199_v51, %v199_v51 }
  0xf3   :  { %v354_v62 = vadd.f32 %v353_v57, %v339_v56  ;;  %v449_v63 = vpack.c.bf16 %v191_v58, %v188_v46  ;;  %v318_v0 = vadd.f32 %v317_v55, %v191_v58  ;;  %v340_v1 = vmul.f32 %v191_v58, %v191_v58 }
  0xf4   :  { %478 = vst [vmem:[%s659_s3 + $0x18] sm:$0xff] %v454_v59   ;;  %482 = vst [vmem:[%s659_s3 + $0x38] sm:$0xff] %v474_v61   ;;  %v469_v6 = vpack.c.bf16 %v223_v2, %v220_v60  ;;  %v347_v24 = vmul.f32 %v220_v60, %v220_v60  ;;  %v348_v30 = vmul.f32 %v223_v2, %v223_v2 }
  0xf5   :  { %477 = vst [vmem:[%s659_s3 + $0x10] sm:$0xff] %v449_v63   ;;  %v319_v4 = vadd.f32 %v318_v0, %v196_v50  ;;  %v355_v5 = vadd.f32 %v354_v62, %v340_v1  ;;  %v350_v33 = vmul.f32 %v231_v53, %v231_v53 }
  0xf6   :  { %481 = vst [vmem:[%s659_s3 + $0x30] sm:$0xff] %v469_v6  }
  0xf7   :  { %v356_v8 = vadd.f32 %v355_v5, %v341_v3  ;;  %v320_v9 = vadd.f32 %v319_v4, %v199_v51 }
  0xf9   :  { %v321_v11 = vadd.f32 %v320_v9, %v613_v20  ;;  %v357_v12 = vadd.f32 %v356_v8, %v342_v7 }
  0xfb   :  { %v358_v13 = vadd.f32 %v357_v12, %v343_v10  ;;  %v322_v14 = vadd.f32 %v321_v11, %v207_v28 }
  0xfd   :  { %v323_v18 = vadd.f32 %v322_v14, %v611_v16  ;;  %v359_v19 = vadd.f32 %v358_v13, %v344_v15 }
  0xff   :  { %v360_v22 = vadd.f32 %v359_v19, %v345_v17  ;;  %v324_v23 = vadd.f32 %v323_v18, %v615_v25 }
 0x101   :  { %v325_v26 = vadd.f32 %v324_v23, %v220_v60  ;;  %v361_v27 = vadd.f32 %v360_v22, %v346_v21 }
 0x103   :  { %v362_v20 = vadd.f32 %v361_v27, %v347_v24  ;;  %v326_v29 = vadd.f32 %v325_v26, %v223_v2 }
 0x105   :  { %v327_v28 = vadd.f32 %v326_v29, %v228_v42  ;;  %v363_v32 = vadd.f32 %v362_v20, %v348_v30 }
 0x107   :  { %v328_v34 = vadd.f32 %v327_v28, %v231_v53  ;;  %v364_v35 = vadd.f32 %v363_v32, %v349_v31 }
 0x109   :  { %v329_v16 = vrot.slane %v328_v34, 4  ;;  %v365_v36 = vadd.f32 %v364_v35, %v350_v33 }
 0x10b   :  { %v330_v37 = vadd.f32 %v329_v16, %v328_v34  ;;  %v366_v38 = vrot.slane %v365_v36, 4 }
 0x10d   :  { %v331_v39 = vrot.slane %v330_v37, 2  ;;  %v367_v40 = vadd.f32 %v366_v38, %v365_v36 }
 0x10f   :  { %v332_v41 = vadd.f32 %v331_v39, %v330_v37  ;;  %v368_v25 = vrot.slane %v367_v40, 2 }
 0x111   :  { %v333_v43 = vrot.slane %v332_v41, 1  ;;  %v369_v44 = vadd.f32 %v368_v25, %v367_v40 }
 0x113   :  { %v370_v45 = vrot.slane %v369_v44, 1  ;;  %v334_v46 = vadd.f32 %v333_v43, %v332_v41 }
 0x115   :  { %v371_v47 = vadd.f32 %v370_v45, %v369_v44 }
 0x117   :  { %v373_v48 = vsel %vm372_vm1, %v334_v46, %v371_v47 }
 0x118   :  { %374 = vst [vmem:[%s660_s4] sm:$0x3] %v373_v48 }

// kernel: conv_forward.10
= control target key start
LH: loop header
LB: loop body
LE: loop exit
PB: predicated region body
PF: predicated region fallthrough
CT: control target
= control target key end

     0   :  { %s1237_s15 = smov 0   ;;  %s1424_s0 = inlined_call_operand.vmem [shape: bf16[512,32], index: 0, kind: input, shape index: {}]   ;;  %s1425_s1 = inlined_call_operand.vmem [shape: bf16[32,128], index: 1, kind: input, shape index: {}]   ;;  %s1426_s2 = inlined_call_operand.vmem [shape: f32[1,128], index: 2, kind: input, shape index: {}]   ;;  %s1427_s3 = inlined_call_operand.vmem [shape: bf16[512,128], index: 3, kind: output, shape index: {0}]   ;;  %s1428_s4 = inlined_call_operand.vmem [shape: f32[2,2,128], index: 4, kind: output, shape index: {1}]  }
   0x1 LB: > { %s1243_s16 = sadd.s32 4294967295, %s1210_s15   ;;  %p918_p0 = scmp.ge.s32.totalorder %s1210_s15, 1  ;;  %s1210_s15 = sphi %s1237_s15, %s15_s15  }
   0x2   : > { %p166_p1 = scmp.lt.s32.totalorder %s1210_s15, 3 }
   0x4   : > { %p167_p2 = pnand %p918_p0, %p166_p1 }
   0x5   : > { %v1186_v0 = vld [vmem:[%s1425_s1] sm:$0xff] (!%p167_p2)   ;;  %s919_s19 = sshll.u32 (!%p167_p2), %s1243_s16, 5  ;;  %v1187_v1 = vld [vmem:[%s1425_s1 + $0x8] sm:$0xff] (!%p167_p2)   ;;  %vm348_vm0 = vcmask (!%p167_p2), 261120   ;;  %p208_p4 = scmp.lt.s32.totalorder (!%p167_p2), %s1243_s16, 1  ;;  %vm824_vm1 = vcmask (!%p167_p2), 1040384  }
   0x6   : > { %170 = sbr.rel (%p167_p2) target bundleno = 313 (0x139), region = 32  ;;  %p197_p3 = scmp.lt.s32.totalorder (!%p167_p2), %s919_s19, 63  ;;  %1138 = vmatprep.subr.bf16.mxu0 (!%p167_p2), %v1186_v0  ;;  %1174 = vmatprep.subr.bf16.mxu1 (!%p167_p2), %v1186_v0  ;;  %v1299_v18 = vld [vmem:[%s1426_s2] ss:$0 sm:$0xff] (!%p167_p2) }
   0x7   : > { %1139 = vmatpush3.bf16.msra.mxu0 (!%p167_p2), %v1186_v0  ;;  %1176 = vmatpush3.bf16.msra.mxu1 (!%p167_p2), %v1186_v0 }
   0x8   : > { %1140 = vmatprep.subr.bf16.mxu0 (!%p167_p2), %v1187_v1  ;;  %1175 = vmatprep.subr.bf16.mxu1 (!%p167_p2), %v1187_v1 }
   0xb   : > { %1141 = vmatpush3.bf16.msra.mxu0 (!%p167_p2), %v1187_v1  ;;  %1177 = vmatpush3.bf16.msra.mxu1 (!%p167_p2), %v1187_v1 }
   0xd   : > { %s1430_s19 = smov (!%p197_p3, %s919_s19), 63  ;;  %s1432_s16 = smov (!%p208_p4, %s1243_s16), 1 }
   0xe   : > { %s920_s22 = sshll.u32 %s1430_s19, 2  ;;  %s923_s5 = sshll.u32 %s1432_s16, 1 }
   0xf   : > { %s1262_s25 = scalar_lea.vmem %s1424_s0, %s920_s22  ;;  %s1309_s30 = scalar_lea.vmem %s1427_s3, %s920_s22 }
  0x10   : > { %v1188_v2 = vld [vmem:[%s1262_s25] sm:$0xff]   ;;  %v1189_v3 = vld [vmem:[%s1262_s25 + $0x8] sm:$0xff]   ;;  %v1190_v4 = vld [vmem:[%s1262_s25 + $0x10] sm:$0xff]   ;;  %s211_s8 = scalar_lea.vmem %s1428_s4, %s923_s5 }
  0x11   : > { %1142 = vmatprep.mubr.msk.bf16.mxu0 %vm348_vm0, %v1188_v2  ;;  %v1191_v5 = vld [vmem:[%s1262_s25 + $0x18] sm:$0xff]   ;;  %v1192_v6 = vld [vmem:[%s1262_s25 + $0x20] sm:$0xff]   ;;  %v1197_v8 = vld [vmem:[%s1262_s25 + $0x48] sm:$0xff]  }
  0x12   : > { %1143 = vmatmul.mubr.msk.bf16.vlgmr.msra.gmra.mrb[0].mxu0 %vm348_vm0, %v1189_v3  ;;  %v1196_v7 = vld [vmem:[%s1262_s25 + $0x40] sm:$0xff]   ;;  %v1198_v9 = vld [vmem:[%s1262_s25 + $0x50] sm:$0xff]   ;;  %v1193_v10 = vld [vmem:[%s1262_s25 + $0x28] sm:$0xff]  }
  0x13   : > { %1146 = vmatprep.mubr.msk.bf16.mxu0 %vm348_vm0, %v1190_v4  ;;  %1158 = vmatprep.mubr.msk.bf16.mxu1 %vm348_vm0, %v1196_v7  ;;  %v1199_v11 = vld [vmem:[%s1262_s25 + $0x58] sm:$0xff]   ;;  %v1194_v12 = vld [vmem:[%s1262_s25 + $0x30] sm:$0xff]   ;;  %v1200_v13 = vld [vmem:[%s1262_s25 + $0x60] sm:$0xff]  }
  0x14   : > { %1159 = vmatmul.mubr.msk.bf16.vlgmr.msra.gmra.mrb[0].mxu1 %vm348_vm0, %v1197_v8  ;;  %v1195_v14 = vld [vmem:[%s1262_s25 + $0x38] sm:$0xff]   ;;  %v1201_v15 = vld [vmem:[%s1262_s25 + $0x68] sm:$0xff]   ;;  %v1202_v16 = vld [vmem:[%s1262_s25 + $0x70] sm:$0xff]  }
  0x15   : > { %1162 = vmatprep.mubr.msk.bf16.mxu1 %vm348_vm0, %v1198_v9  ;;  %v1203_v17 = vld [vmem:[%s1262_s25 + $0x78] sm:$0xff]  }
  0x1a   : > { %1147 = vmatmul.mubr.msk.bf16.gmra.mrb[4].mxu0 %vm348_vm0, %v1191_v5 }
  0x1b   : > { %1150 = vmatprep.mubr.msk.bf16.mxu0 %vm348_vm0, %v1192_v6 }
  0x1c   : > { %1163 = vmatmul.mubr.msk.bf16.gmra.mrb[4].mxu1 %vm348_vm0, %v1199_v11 }
  0x1d   : > { %1166 = vmatprep.mubr.msk.bf16.mxu1 %vm348_vm0, %v1200_v13 }
  0x22   : > { %1151 = vmatmul.mubr.msk.bf16.gmra.mrb[8].mxu0 %vm348_vm0, %v1193_v10 }
  0x23   : > { %1154 = vmatprep.mubr.msk.bf16.mxu0 %vm348_vm0, %v1194_v12 }
  0x24   : > { %1167 = vmatmul.mubr.msk.bf16.gmra.mrb[8].mxu1 %vm348_vm0, %v1201_v15 }
  0x25   : > { %1170 = vmatprep.mubr.msk.bf16.mxu1 %vm348_vm0, %v1202_v16 }
  0x2a   : > { %1155 = vmatmul.mubr.msk.bf16.gmra.mrb[12].mxu0 %vm348_vm0, %v1195_v14 }
  0x2c   : > { %1171 = vmatmul.mubr.msk.bf16.gmra.mrb[12].mxu1 %vm348_vm0, %v1203_v17 }
  0xe5   : > { %v1144_v19 = vpop.f32.mrb[0].mxu0 }
  0xe6   : > { %v431_v20 = vpop.f32.mrb[1].mxu0  ;;  %v440_v23 = vadd.f32 %v1144_v19, %v1299_v18 }
  0xe7   : > { %v432_v21 = vadd.f32 %v1299_v18, %v431_v20  ;;  %v1145_v22 = vpop.f32.mrb[2].mxu0  ;;  %v1160_v36 = vpop.f32.mrb[0].mxu1 }
  0xe8   : > { %v443_v24 = vadd.f32 %v1145_v22, %v1299_v18  ;;  %v434_v25 = vpop.f32.mrb[3].mxu0  ;;  %v757_v32 = vmul.f32 %v440_v23, %v440_v23  ;;  %v1315_v38 = vadd.f32 %v1160_v36, %v1299_v18  ;;  %v495_v39 = vpop.f32.mrb[1].mxu1 }
  0xe9   : > { %v435_v26 = vadd.f32 %v1299_v18, %v434_v25  ;;  %v755_v28 = vmul.f32 %v432_v21, %v432_v21  ;;  %v1161_v45 = vpop.f32.mrb[2].mxu1  ;;  %v1325_v56 = vadd.f32 %v1299_v18, %v495_v39 }
  0xea   : > { %v1033_v27 = vpack.c.bf16 %v443_v24, %v440_v23  ;;  %v758_v40 = vmul.f32 %v443_v24, %v443_v24  ;;  %v1321_v49 = vadd.f32 %v1161_v45, %v1299_v18  ;;  %v498_v50 = vpop.f32.mrb[3].mxu1 }
  0xeb   : > { %v1028_v29 = vpack.c.bf16 %v435_v26, %v432_v21  ;;  %v718_v30 = vadd.f32 %v435_v26, %v432_v21  ;;  %v756_v31 = vmul.f32 %v435_v26, %v435_v26  ;;  %v1332_v62 = vadd.f32 %v1299_v18, %v498_v50 }
  0xec   : > { %1105 = vst [vmem:[%s1309_s30 + $0x8] sm:$0xff] %v1033_v27   ;;  %v1073_v57 = vpack.c.bf16 %v1321_v49, %v1315_v38 }
  0xed   : > { %1029 = vst [vmem:[%s1309_s30] sm:$0xff] %v1028_v29   ;;  %v719_v33 = vadd.f32 %v718_v30, %v440_v23  ;;  %v787_v34 = vadd.f32 %v756_v31, %v755_v28  ;;  %v1148_v35 = vpop.f32.mrb[4].mxu0  ;;  %v1068_v5 = vpack.c.bf16 %v1332_v62, %v1325_v56 }
  0xee   : > { %v447_v37 = vpop.f32.mrb[5].mxu0  ;;  %v456_v46 = vadd.f32 %v1148_v35, %v1299_v18  ;;  %1113 = vst [vmem:[%s1309_s30 + $0x48] sm:$0xff] %v1073_v57  }
  0xef   : > { %v788_v41 = vadd.f32 %v787_v34, %v757_v32  ;;  %v448_v42 = vadd.f32 %v1299_v18, %v447_v37  ;;  %v720_v43 = vadd.f32 %v719_v33, %v443_v24  ;;  %v1149_v44 = vpop.f32.mrb[6].mxu0  ;;  %v1164_v3 = vpop.f32.mrb[4].mxu1  ;;  %1112 = vst [vmem:[%s1309_s30 + $0x40] sm:$0xff] %v1068_v5  }
  0xf0   : > { %v459_v47 = vadd.f32 %v1149_v44, %v1299_v18  ;;  %v450_v48 = vpop.f32.mrb[7].mxu0  ;;  %v761_v63 = vmul.f32 %v456_v46, %v456_v46  ;;  %v1338_v6 = vadd.f32 %v1164_v3, %v1299_v18  ;;  %v511_v7 = vpop.f32.mrb[5].mxu1 }
  0xf1   : > { %v721_v51 = vadd.f32 %v720_v43, %v448_v42  ;;  %v759_v52 = vmul.f32 %v448_v42, %v448_v42  ;;  %v789_v53 = vadd.f32 %v788_v41, %v758_v40  ;;  %v451_v54 = vadd.f32 %v1299_v18, %v450_v48  ;;  %v1165_v13 = vpop.f32.mrb[6].mxu1 }
  0xf2   : > { %v1043_v55 = vpack.c.bf16 %v459_v47, %v456_v46  ;;  %v762_v8 = vmul.f32 %v459_v47, %v459_v47  ;;  %v1345_v17 = vadd.f32 %v1165_v13, %v1299_v18  ;;  %v514_v19 = vpop.f32.mrb[7].mxu1  ;;  %v1349_v25 = vadd.f32 %v1299_v18, %v511_v7 }
  0xf3   : > { %v790_v58 = vadd.f32 %v789_v53, %v759_v52  ;;  %v1038_v59 = vpack.c.bf16 %v451_v54, %v448_v42  ;;  %v722_v60 = vadd.f32 %v721_v51, %v451_v54  ;;  %v760_v61 = vmul.f32 %v451_v54, %v451_v54 }
  0xf4   : > { %1107 = vst [vmem:[%s1309_s30 + $0x18] sm:$0xff] %v1043_v55   ;;  %v1083_v26 = vpack.c.bf16 %v1345_v17, %v1338_v6  ;;  %v1356_v31 = vadd.f32 %v1299_v18, %v514_v19 }
  0xf5   : > { %1106 = vst [vmem:[%s1309_s30 + $0x10] sm:$0xff] %v1038_v59   ;;  %v723_v0 = vadd.f32 %v722_v60, %v456_v46  ;;  %v791_v1 = vadd.f32 %v790_v58, %v760_v61  ;;  %v1152_v2 = vpop.f32.mrb[8].mxu0 }
  0xf6   : > { %v463_v4 = vpop.f32.mrb[9].mxu0  ;;  %v472_v14 = vadd.f32 %v1152_v2, %v1299_v18  ;;  %1115 = vst [vmem:[%s1309_s30 + $0x58] sm:$0xff] %v1083_v26   ;;  %v1078_v39 = vpack.c.bf16 %v1356_v31, %v1349_v25 }
  0xf7   : > { %v792_v9 = vadd.f32 %v791_v1, %v761_v63  ;;  %v464_v10 = vadd.f32 %v1299_v18, %v463_v4  ;;  %v724_v11 = vadd.f32 %v723_v0, %v459_v47  ;;  %v1153_v12 = vpop.f32.mrb[10].mxu0  ;;  %v1168_v36 = vpop.f32.mrb[8].mxu1 }
  0xf8   : > { %v475_v15 = vadd.f32 %v1153_v12, %v1299_v18  ;;  %v466_v16 = vpop.f32.mrb[11].mxu0  ;;  %v765_v32 = vmul.f32 %v472_v14, %v472_v14  ;;  %v1362_v40 = vadd.f32 %v1168_v36, %v1299_v18  ;;  %v527_v41 = vpop.f32.mrb[9].mxu1  ;;  %1114 = vst [vmem:[%s1309_s30 + $0x50] sm:$0xff] %v1078_v39   ;;  %v775_v36 = vmul.f32 %v1349_v25, %v1349_v25 }
  0xf9   : > { %v725_v20 = vadd.f32 %v724_v11, %v464_v10  ;;  %v763_v21 = vmul.f32 %v464_v10, %v464_v10  ;;  %v793_v22 = vadd.f32 %v792_v9, %v762_v8  ;;  %v467_v23 = vadd.f32 %v1299_v18, %v466_v16  ;;  %v1169_v47 = vpop.f32.mrb[10].mxu1 }
  0xfa   : > { %v1053_v24 = vpack.c.bf16 %v475_v15, %v472_v14  ;;  %v766_v42 = vmul.f32 %v475_v15, %v475_v15  ;;  %v1369_v52 = vadd.f32 %v1169_v47, %v1299_v18  ;;  %v530_v53 = vpop.f32.mrb[11].mxu1  ;;  %v528_v60 = vadd.f32 %v1299_v18, %v527_v41 }
  0xfb   : > { %v794_v27 = vadd.f32 %v793_v22, %v763_v21  ;;  %v1048_v28 = vpack.c.bf16 %v467_v23, %v464_v10  ;;  %v726_v29 = vadd.f32 %v725_v20, %v467_v23  ;;  %v764_v30 = vmul.f32 %v467_v23, %v467_v23 }
  0xfc   : > { %1109 = vst [vmem:[%s1309_s30 + $0x28] sm:$0xff] %v1053_v24   ;;  %v1093_v61 = vpack.c.bf16 %v1369_v52, %v1362_v40  ;;  %v531_v3 = vadd.f32 %v1299_v18, %v530_v53  ;;  %v771_v9 = vmul.f32 %v1325_v56, %v1325_v56 }
  0xfd   : > { %1108 = vst [vmem:[%s1309_s30 + $0x20] sm:$0xff] %v1048_v28   ;;  %v727_v33 = vadd.f32 %v726_v29, %v472_v14  ;;  %v795_v34 = vadd.f32 %v794_v27, %v764_v30  ;;  %v1156_v35 = vpop.f32.mrb[12].mxu0  ;;  %v772_v29 = vmul.f32 %v1332_v62, %v1332_v62 }
  0xfe   : > { %v479_v37 = vpop.f32.mrb[13].mxu0  ;;  %v488_v48 = vadd.f32 %v1156_v35, %v1299_v18  ;;  %1117 = vst [vmem:[%s1309_s30 + $0x68] sm:$0xff] %v1093_v61   ;;  %v1088_v10 = vpack.c.bf16 %v531_v3, %v528_v60  ;;  %v780_v53 = vmul.f32 %v531_v3, %v531_v3 }
  0xff   : > { %v796_v43 = vadd.f32 %v795_v34, %v765_v32  ;;  %v480_v44 = vadd.f32 %v1299_v18, %v479_v37  ;;  %v728_v45 = vadd.f32 %v727_v33, %v475_v15  ;;  %v1157_v46 = vpop.f32.mrb[14].mxu0  ;;  %v1172_v8 = vpop.f32.mrb[12].mxu1  ;;  %v773_v32 = vmul.f32 %v1315_v38, %v1315_v38 }
 0x100   : > { %v491_v50 = vadd.f32 %v1157_v46, %v1299_v18  ;;  %v482_v51 = vpop.f32.mrb[15].mxu0  ;;  %v769_v4 = vmul.f32 %v488_v48, %v488_v48  ;;  %v552_v11 = vadd.f32 %v1172_v8, %v1299_v18  ;;  %v543_v12 = vpop.f32.mrb[13].mxu1  ;;  %1116 = vst [vmem:[%s1309_s30 + $0x60] sm:$0xff] %v1088_v10  }
 0x101   : > { %v729_v54 = vadd.f32 %v728_v45, %v480_v44  ;;  %v767_v55 = vmul.f32 %v480_v44, %v480_v44  ;;  %v797_v57 = vadd.f32 %v796_v43, %v766_v42  ;;  %v483_v58 = vadd.f32 %v1299_v18, %v482_v51  ;;  %v1173_v19 = vpop.f32.mrb[14].mxu1 }
 0x102   : > { %v1063_v59 = vpack.c.bf16 %v491_v50, %v488_v48  ;;  %v770_v13 = vmul.f32 %v491_v50, %v491_v50  ;;  %v544_v16 = vadd.f32 %v1299_v18, %v543_v12  ;;  %v555_v20 = vadd.f32 %v1173_v19, %v1299_v18  ;;  %v546_v21 = vpop.f32.mrb[15].mxu1 }
 0x103   : > { %v798_v63 = vadd.f32 %v797_v57, %v767_v55  ;;  %v1058_v0 = vpack.c.bf16 %v483_v58, %v480_v44  ;;  %v730_v1 = vadd.f32 %v729_v54, %v483_v58  ;;  %v768_v2 = vmul.f32 %v483_v58, %v483_v58 }
 0x104   : > { %1111 = vst [vmem:[%s1309_s30 + $0x38] sm:$0xff] %v1063_v59   ;;  %v547_v24 = vadd.f32 %v1299_v18, %v546_v21  ;;  %v1103_v26 = vpack.c.bf16 %v555_v20, %v552_v11  ;;  %v777_v42 = vmul.f32 %v1338_v6, %v1338_v6 }
 0x105   : > { %1110 = vst [vmem:[%s1309_s30 + $0x30] sm:$0xff] %v1058_v0   ;;  %v731_v5 = vadd.f32 %v730_v1, %v488_v48  ;;  %v799_v7 = vadd.f32 %v798_v63, %v768_v2  ;;  %v785_v1 = vmul.f32 %v552_v11, %v552_v11 }
 0x106   : > { %v1098_v30 = vpack.c.bf16 %v547_v24, %v544_v16  ;;  %1119 = vst [vmem:[%s1309_s30 + $0x78] sm:$0xff] %v1103_v26   ;;  %v784_v0 = vmul.f32 %v547_v24, %v547_v24 }
 0x107   : > { %v800_v14 = vadd.f32 %v799_v7, %v769_v4  ;;  %v732_v15 = vadd.f32 %v731_v5, %v491_v50  ;;  %v786_v4 = vmul.f32 %v555_v20, %v555_v20 }
 0x108   : > { %1118 = vst [vmem:[%s1309_s30 + $0x70] sm:$0xff] %v1098_v30  }
 0x109   : > { %v733_v22 = vadd.f32 %v732_v15, %v1325_v56  ;;  %v801_v23 = vadd.f32 %v800_v14, %v770_v13  ;;  %v774_v56 = vmul.f32 %v1321_v49, %v1321_v49 }
 0x10b   : > { %v802_v27 = vadd.f32 %v801_v23, %v771_v9  ;;  %v734_v28 = vadd.f32 %v733_v22, %v1332_v62 }
 0x10d   : > { %v735_v33 = vadd.f32 %v734_v28, %v1315_v38  ;;  %v803_v34 = vadd.f32 %v802_v27, %v772_v29  ;;  %v776_v38 = vmul.f32 %v1356_v31, %v1356_v31 }
 0x10f   : > { %v804_v18 = vadd.f32 %v803_v34, %v773_v32  ;;  %v736_v35 = vadd.f32 %v735_v33, %v1321_v49  ;;  %v778_v49 = vmul.f32 %v1345_v17, %v1345_v17 }
 0x111   : > { %v737_v62 = vadd.f32 %v736_v35, %v1349_v25  ;;  %v805_v37 = vadd.f32 %v804_v18, %v774_v56  ;;  %v779_v25 = vmul.f32 %v528_v60, %v528_v60 }
 0x113   : > { %v806_v39 = vadd.f32 %v805_v37, %v775_v36  ;;  %v738_v41 = vadd.f32 %v737_v62, %v1356_v31  ;;  %v781_v31 = vmul.f32 %v1362_v40, %v1362_v40 }
 0x115   : > { %v739_v43 = vadd.f32 %v738_v41, %v1338_v6  ;;  %v807_v44 = vadd.f32 %v806_v39, %v776_v38  ;;  %v782_v6 = vmul.f32 %v1369_v52, %v1369_v52 }
 0x117   : > { %v808_v45 = vadd.f32 %v807_v44, %v777_v42  ;;  %v740_v46 = vadd.f32 %v739_v43, %v1345_v17  ;;  %v783_v17 = vmul.f32 %v544_v16, %v544_v16 }
 0x119   : > { %v741_v47 = vadd.f32 %v740_v46, %v528_v60  ;;  %v809_v48 = vadd.f32 %v808_v45, %v778_v49 }
 0x11b   : > { %v810_v50 = vadd.f32 %v809_v48, %v779_v25  ;;  %v742_v51 = vadd.f32 %v741_v47, %v531_v3 }
 0x11d   : > { %v743_v54 = vadd.f32 %v742_v51, %v1362_v40  ;;  %v811_v55 = vadd.f32 %v810_v50, %v780_v53 }
 0x11f   : > { %v812_v57 = vadd.f32 %v811_v55, %v781_v31  ;;  %v744_v58 = vadd.f32 %v743_v54, %v1369_v52 }
 0x121   : > { %v745_v59 = vadd.f32 %v744_v58, %v544_v16  ;;  %v813_v60 = vadd.f32 %v812_v57, %v782_v6 }
 0x123   : > { %v814_v61 = vadd.f32 %v813_v60, %v783_v17  ;;  %v746_v63 = vadd.f32 %v745_v59, %v547_v24 }
 0x125   : > { %v747_v2 = vadd.f32 %v746_v63, %v552_v11  ;;  %v815_v3 = vadd.f32 %v814_v61, %v784_v0 }
 0x127   : > { %v748_v40 = vadd.f32 %v747_v2, %v555_v20  ;;  %v816_v5 = vadd.f32 %v815_v3, %v785_v1 }
 0x129   : > { %v749_v7 = vrot.slane %v748_v40, 4  ;;  %v817_v8 = vadd.f32 %v816_v5, %v786_v4 }
 0x12b   : > { %v750_v9 = vadd.f32 %v749_v7, %v748_v40  ;;  %v818_v10 = vrot.slane %v817_v8, 4 }
 0x12d   : > { %v751_v12 = vrot.slane %v750_v9, 2  ;;  %v819_v52 = vadd.f32 %v818_v10, %v817_v8 }
 0x12f   : > { %v752_v13 = vadd.f32 %v751_v12, %v750_v9  ;;  %v820_v14 = vrot.slane %v819_v52, 2 }
 0x131   : > { %v753_v15 = vrot.slane %v752_v13, 1  ;;  %v821_v16 = vadd.f32 %v820_v14, %v819_v52 }
 0x133   : > { %v822_v19 = vrot.slane %v821_v16, 1  ;;  %v754_v11 = vadd.f32 %v753_v15, %v752_v13 }
 0x135   : > { %v823_v20 = vadd.f32 %v822_v19, %v821_v16 }
 0x137   : > { %v825_v21 = vsel %vm824_vm1, %v754_v11, %v823_v20 }
 0x138   : > { %826 = vst [vmem:[%s211_s8] sm:$0x3] %v825_v21 }
 0x139 PF: > { %s15_s15 = sadd.s32 1, %s1210_s15  }
 0x13a   : > { %p12_p5 = scmp.ge.s32.totalorder %s15_s15, 4  }
 0x13c   :  { %14 = sbr.rel (!%p12_p5) target bundleno = 1 (0x1), region = 74 }

// kernel: conv_forward.11
= control target key start
LH: loop header
LB: loop body
LE: loop exit
PB: predicated region body
PF: predicated region fallthrough
CT: control target
= control target key end

     0   :  { %s847_s12 = smov 0   ;;  %s976_s0 = inlined_call_operand.vmem [shape: bf16[2048,16], index: 0, kind: input, shape index: {}]   ;;  %s977_s1 = inlined_call_operand.vmem [shape: bf16[16,128], index: 1, kind: input, shape index: {}]   ;;  %s978_s2 = inlined_call_operand.vmem [shape: f32[1,128], index: 2, kind: input, shape index: {}]   ;;  %s979_s3 = inlined_call_operand.vmem [shape: f32[2048,128], index: 3, kind: output, shape index: {}]  }
   0x1 LB: > { %s632_s13 = sadd.s32 4294967295, %s825_s12   ;;  %p636_p0 = scmp.ge.s32.totalorder %s825_s12, 1  ;;  %s825_s12 = sphi %s847_s12, %s13_s12  }
   0x2   : > { %p138_p1 = scmp.lt.s32.totalorder %s825_s12, 9 }
   0x4   : > { %p139_p2 = pnand %p636_p0, %p138_p1 }
   0x5   : > { %v738_v0 = vld [vmem:[%s977_s1] sm:$0xff] (!%p139_p2)   ;;  %s637_s16 = sshll.u32 (!%p139_p2), %s632_s13, 5  ;;  %vm302_vm0 = vcmask (!%p139_p2), 130048  }
   0x6   : > { %142 = sbr.rel (%p139_p2) target bundleno = 277 (0x115), region = 32  ;;  %p163_p3 = scmp.lt.s32.totalorder (!%p139_p2), %s637_s16, 255  ;;  %694 = vmatprep.subr.bf16.mxu0 (!%p139_p2), %v738_v0  ;;  %728 = vmatprep.subr.bf16.mxu1 (!%p139_p2), %v738_v0  ;;  %v901_v17 = vld [vmem:[%s978_s2] ss:$0 sm:$0xff] (!%p139_p2) }
   0x7   : > { %695 = vmatpush3.bf16.msra.mxu0 (!%p139_p2), %v738_v0  ;;  %729 = vmatpush3.bf16.msra.mxu1 (!%p139_p2), %v738_v0 }
   0xd   : > { %s981_s16 = smov (!%p163_p3, %s637_s16), 255 }
   0xe   : > { %s638_s17 = sshll.u32 %s981_s16, 2  ;;  %s640_s23 = sshll.u32 %s981_s16, 3 }
   0xf   : > { %s864_s20 = scalar_lea.vmem %s976_s0, %s638_s17  ;;  %s918_s26 = scalar_lea.vmem %s979_s3, %s640_s23 }
  0x10   : > { %v739_v1 = vld [vmem:[%s864_s20] sm:$0xff]   ;;  %v741_v3 = vld [vmem:[%s864_s20 + $0x8] sm:$0xff]   ;;  %v743_v5 = vld [vmem:[%s864_s20 + $0x10] sm:$0xff]  }
  0x11   : > { %v740_v2 = vld [vmem:[%s864_s20 + $0x40] sm:$0xff]   ;;  %696 = vmatprep.mubr.msk.bf16.mxu0 %vm302_vm0, %v739_v1  ;;  %v742_v4 = vld [vmem:[%s864_s20 + $0x48] sm:$0xff]   ;;  %v744_v6 = vld [vmem:[%s864_s20 + $0x50] sm:$0xff]  }
  0x12   : > { %712 = vmatprep.mubr.msk.bf16.mxu1 %vm302_vm0, %v740_v2  ;;  %697 = vmatmul.mubr.msk.bf16.vlgmr.msra.gmra.mrb[0].mxu0 %vm302_vm0, %v741_v3  ;;  %v745_v7 = vld [vmem:[%s864_s20 + $0x18] sm:$0xff]   ;;  %v747_v9 = vld [vmem:[%s864_s20 + $0x20] sm:$0xff]   ;;  %v749_v11 = vld [vmem:[%s864_s20 + $0x28] sm:$0xff]  }
  0x13   : > { %713 = vmatmul.mubr.msk.bf16.vlgmr.msra.gmra.mrb[0].mxu1 %vm302_vm0, %v742_v4  ;;  %700 = vmatprep.mubr.msk.bf16.mxu0 %vm302_vm0, %v743_v5  ;;  %v746_v8 = vld [vmem:[%s864_s20 + $0x58] sm:$0xff]   ;;  %v748_v10 = vld [vmem:[%s864_s20 + $0x60] sm:$0xff]   ;;  %v750_v12 = vld [vmem:[%s864_s20 + $0x68] sm:$0xff]  }
  0x14   : > { %716 = vmatprep.mubr.msk.bf16.mxu1 %vm302_vm0, %v744_v6  ;;  %v751_v13 = vld [vmem:[%s864_s20 + $0x30] sm:$0xff]   ;;  %v753_v15 = vld [vmem:[%s864_s20 + $0x38] sm:$0xff]  }
  0x15   : > { %v752_v14 = vld [vmem:[%s864_s20 + $0x70] sm:$0xff]   ;;  %v754_v16 = vld [vmem:[%s864_s20 + $0x78] sm:$0xff]  }
  0x1a   : > { %701 = vmatmul.mubr.msk.bf16.gmra.mrb[4].mxu0 %vm302_vm0, %v745_v7 }
  0x1b   : > { %717 = vmatmul.mubr.msk.bf16.gmra.mrb[4].mxu1 %vm302_vm0, %v746_v8  ;;  %704 = vmatprep.mubr.msk.bf16.mxu0 %vm302_vm0, %v747_v9 }
  0x1c   : > { %720 = vmatprep.mubr.msk.bf16.mxu1 %vm302_vm0, %v748_v10 }
  0x22   : > { %705 = vmatmul.mubr.msk.bf16.gmra.mrb[8].mxu0 %vm302_vm0, %v749_v11 }
  0x23   : > { %721 = vmatmul.mubr.msk.bf16.gmra.mrb[8].mxu1 %vm302_vm0, %v750_v12  ;;  %708 = vmatprep.mubr.msk.bf16.mxu0 %vm302_vm0, %v751_v13 }
  0x24   : > { %724 = vmatprep.mubr.msk.bf16.mxu1 %vm302_vm0, %v752_v14 }
  0x2a   : > { %709 = vmatmul.mubr.msk.bf16.gmra.mrb[12].mxu0 %vm302_vm0, %v753_v15 }
  0x2b   : > { %725 = vmatmul.mubr.msk.bf16.gmra.mrb[12].mxu1 %vm302_vm0, %v754_v16 }
  0xe5   : > { %v698_v18 = vpop.f32.mrb[0].mxu0 }
  0xe6   : > { %v394_v19 = vadd.f32 %v698_v18, %v901_v17  ;;  %v714_v20 = vpop.f32.mrb[0].mxu1  ;;  %v385_v21 = vpop.f32.mrb[1].mxu0 }
  0xe7   : > { %v458_v22 = vadd.f32 %v714_v20, %v901_v17  ;;  %v386_v23 = vadd.f32 %v901_v17, %v385_v21  ;;  %v449_v24 = vpop.f32.mrb[1].mxu1  ;;  %v699_v25 = vpop.f32.mrb[2].mxu0 }
  0xe8   : > { %755 = vtanh.f32 %v394_v19  ;;  %v450_v26 = vadd.f32 %v901_v17, %v449_v24  ;;  %v397_v27 = vadd.f32 %v699_v25, %v901_v17  ;;  %v715_v28 = vpop.f32.mrb[2].mxu1  ;;  %v388_v29 = vpop.f32.mrb[3].mxu0 }
  0xe9   : > { %757 = vtanh.f32 %v458_v22  ;;  %v461_v30 = vadd.f32 %v715_v28, %v901_v17  ;;  %v452_v31 = vpop.f32.mrb[3].mxu1  ;;  %v389_v32 = vadd.f32 %v901_v17, %v388_v29 }
  0xea   : > { %759 = vtanh.f32 %v386_v23  ;;  %v453_v33 = vadd.f32 %v901_v17, %v452_v31 }
  0xeb   : > { %761 = vtanh.f32 %v450_v26 }
  0xec   : > { %763 = vtanh.f32 %v397_v27 }
  0xed   : > { %765 = vtanh.f32 %v461_v30  ;;  %v702_v34 = vpop.f32.mrb[4].mxu0 }
  0xee   : > { %767 = vtanh.f32 %v389_v32  ;;  %v410_v35 = vadd.f32 %v702_v34, %v901_v17  ;;  %v718_v36 = vpop.f32.mrb[4].mxu1  ;;  %v401_v37 = vpop.f32.mrb[5].mxu0 }
  0xef   : > { %769 = vtanh.f32 %v453_v33  ;;  %v474_v38 = vadd.f32 %v718_v36, %v901_v17  ;;  %v402_v39 = vadd.f32 %v901_v17, %v401_v37  ;;  %v465_v40 = vpop.f32.mrb[5].mxu1  ;;  %v703_v41 = vpop.f32.mrb[6].mxu0 }
  0xf0   : > { %771 = vtanh.f32 %v410_v35  ;;  %v466_v42 = vadd.f32 %v901_v17, %v465_v40  ;;  %v413_v43 = vadd.f32 %v703_v41, %v901_v17  ;;  %v719_v44 = vpop.f32.mrb[6].mxu1  ;;  %v404_v45 = vpop.f32.mrb[7].mxu0 }
  0xf1   : > { %773 = vtanh.f32 %v474_v38  ;;  %v477_v46 = vadd.f32 %v719_v44, %v901_v17  ;;  %v468_v47 = vpop.f32.mrb[7].mxu1  ;;  %v405_v49 = vadd.f32 %v901_v17, %v404_v45 }
  0xf2   : > { %v756_v48 = vpop.eup %755  ;;  %775 = vtanh.f32 %v402_v39  ;;  %v469_v51 = vadd.f32 %v901_v17, %v468_v47 }
  0xf3   : > { %v758_v50 = vpop.eup %757  ;;  %546 = vst [vmem:[%s918_s26 + $0x10] sm:$0xff] %v756_v48  ;;  %777 = vtanh.f32 %v466_v42 }
  0xf4   : > { %v760_v52 = vpop.eup %759  ;;  %562 = vst [vmem:[%s918_s26 + $0x90] sm:$0xff] %v758_v50  ;;  %779 = vtanh.f32 %v413_v43 }
  0xf5   : > { %v762_v53 = vpop.eup %761  ;;  %544 = vst [vmem:[%s918_s26] sm:$0xff] %v760_v52  ;;  %781 = vtanh.f32 %v477_v46  ;;  %v706_v54 = vpop.f32.mrb[8].mxu0 }
  0xf6   : > { %v764_v55 = vpop.eup %763  ;;  %560 = vst [vmem:[%s918_s26 + $0x80] sm:$0xff] %v762_v53  ;;  %783 = vtanh.f32 %v405_v49  ;;  %v426_v56 = vadd.f32 %v706_v54, %v901_v17  ;;  %v722_v57 = vpop.f32.mrb[8].mxu1 }
  0xf7   : > { %v417_v58 = vpop.f32.mrb[9].mxu0  ;;  %v766_v59 = vpop.eup %765  ;;  %547 = vst [vmem:[%s918_s26 + $0x18] sm:$0xff] %v764_v55  ;;  %785 = vtanh.f32 %v469_v51  ;;  %v490_v60 = vadd.f32 %v722_v57, %v901_v17 }
  0xf8   : > { %v418_v61 = vadd.f32 %v901_v17, %v417_v58  ;;  %v481_v62 = vpop.f32.mrb[9].mxu1  ;;  %v707_v63 = vpop.f32.mrb[10].mxu0  ;;  %563 = vst [vmem:[%s918_s26 + $0x98] sm:$0xff] %v766_v59  ;;  %787 = vtanh.f32 %v426_v56 }
  0xf9   : > { %v768_v0 = vpop.eup %767  ;;  %v482_v1 = vadd.f32 %v901_v17, %v481_v62  ;;  %v429_v2 = vadd.f32 %v707_v63, %v901_v17  ;;  %v723_v3 = vpop.f32.mrb[10].mxu1  ;;  %789 = vtanh.f32 %v490_v60 }
  0xfa   : > { %v420_v4 = vpop.f32.mrb[11].mxu0  ;;  %v770_v5 = vpop.eup %769  ;;  %545 = vst [vmem:[%s918_s26 + $0x8] sm:$0xff] %v768_v0  ;;  %v493_v6 = vadd.f32 %v723_v3, %v901_v17  ;;  %791 = vtanh.f32 %v418_v61 }
  0xfb   : > { %v484_v7 = vpop.f32.mrb[11].mxu1  ;;  %v772_v8 = vpop.eup %771  ;;  %561 = vst [vmem:[%s918_s26 + $0x88] sm:$0xff] %v770_v5  ;;  %v421_v9 = vadd.f32 %v901_v17, %v420_v4  ;;  %793 = vtanh.f32 %v482_v1 }
  0xfc   : > { %v774_v10 = vpop.eup %773  ;;  %550 = vst [vmem:[%s918_s26 + $0x30] sm:$0xff] %v772_v8  ;;  %v485_v11 = vadd.f32 %v901_v17, %v484_v7  ;;  %795 = vtanh.f32 %v429_v2 }
  0xfd   : > { %v776_v12 = vpop.eup %775  ;;  %566 = vst [vmem:[%s918_s26 + $0xb0] sm:$0xff] %v774_v10  ;;  %797 = vtanh.f32 %v493_v6  ;;  %v710_v14 = vpop.f32.mrb[12].mxu0 }
  0xfe   : > { %v778_v13 = vpop.eup %777  ;;  %548 = vst [vmem:[%s918_s26 + $0x20] sm:$0xff] %v776_v12  ;;  %799 = vtanh.f32 %v421_v9  ;;  %v442_v16 = vadd.f32 %v710_v14, %v901_v17  ;;  %v726_v18 = vpop.f32.mrb[12].mxu1 }
  0xff   : > { %v780_v15 = vpop.eup %779  ;;  %564 = vst [vmem:[%s918_s26 + $0xa0] sm:$0xff] %v778_v13  ;;  %v433_v19 = vpop.f32.mrb[13].mxu0  ;;  %801 = vtanh.f32 %v485_v11  ;;  %v506_v21 = vadd.f32 %v726_v18, %v901_v17 }
 0x100   : > { %v782_v20 = vpop.eup %781  ;;  %551 = vst [vmem:[%s918_s26 + $0x38] sm:$0xff] %v780_v15  ;;  %v434_v22 = vadd.f32 %v901_v17, %v433_v19  ;;  %v497_v23 = vpop.f32.mrb[13].mxu1  ;;  %803 = vtanh.f32 %v442_v16 }
 0x101   : > { %v711_v24 = vpop.f32.mrb[14].mxu0  ;;  %v784_v25 = vpop.eup %783  ;;  %567 = vst [vmem:[%s918_s26 + $0xb8] sm:$0xff] %v782_v20  ;;  %v498_v26 = vadd.f32 %v901_v17, %v497_v23  ;;  %805 = vtanh.f32 %v506_v21 }
 0x102   : > { %v445_v27 = vadd.f32 %v711_v24, %v901_v17  ;;  %v727_v28 = vpop.f32.mrb[14].mxu1  ;;  %v436_v29 = vpop.f32.mrb[15].mxu0  ;;  %549 = vst [vmem:[%s918_s26 + $0x28] sm:$0xff] %v784_v25  ;;  %807 = vtanh.f32 %v434_v22 }
 0x103   : > { %v786_v30 = vpop.eup %785  ;;  %v509_v31 = vadd.f32 %v727_v28, %v901_v17  ;;  %v500_v32 = vpop.f32.mrb[15].mxu1  ;;  %v437_v34 = vadd.f32 %v901_v17, %v436_v29  ;;  %809 = vtanh.f32 %v498_v26 }
 0x104   : > { %v788_v33 = vpop.eup %787  ;;  %565 = vst [vmem:[%s918_s26 + $0xa8] sm:$0xff] %v786_v30  ;;  %v501_v36 = vadd.f32 %v901_v17, %v500_v32  ;;  %811 = vtanh.f32 %v445_v27 }
 0x105   : > { %v790_v35 = vpop.eup %789  ;;  %554 = vst [vmem:[%s918_s26 + $0x50] sm:$0xff] %v788_v33  ;;  %813 = vtanh.f32 %v509_v31 }
 0x106   : > { %v792_v37 = vpop.eup %791  ;;  %570 = vst [vmem:[%s918_s26 + $0xd0] sm:$0xff] %v790_v35  ;;  %815 = vtanh.f32 %v437_v34 }
 0x107   : > { %v794_v38 = vpop.eup %793  ;;  %552 = vst [vmem:[%s918_s26 + $0x40] sm:$0xff] %v792_v37  ;;  %817 = vtanh.f32 %v501_v36 }
 0x108   : > { %v796_v39 = vpop.eup %795  ;;  %568 = vst [vmem:[%s918_s26 + $0xc0] sm:$0xff] %v794_v38 }
 0x109   : > { %v798_v40 = vpop.eup %797  ;;  %555 = vst [vmem:[%s918_s26 + $0x58] sm:$0xff] %v796_v39 }
 0x10a   : > { %v800_v17 = vpop.eup %799  ;;  %571 = vst [vmem:[%s918_s26 + $0xd8] sm:$0xff] %v798_v40 }
 0x10b   : > { %v802_v41 = vpop.eup %801  ;;  %553 = vst [vmem:[%s918_s26 + $0x48] sm:$0xff] %v800_v17 }
 0x10c   : > { %v804_v42 = vpop.eup %803  ;;  %569 = vst [vmem:[%s918_s26 + $0xc8] sm:$0xff] %v802_v41 }
 0x10d   : > { %v806_v43 = vpop.eup %805  ;;  %558 = vst [vmem:[%s918_s26 + $0x70] sm:$0xff] %v804_v42 }
 0x10e   : > { %v808_v44 = vpop.eup %807  ;;  %574 = vst [vmem:[%s918_s26 + $0xf0] sm:$0xff] %v806_v43 }
 0x10f   : > { %v810_v45 = vpop.eup %809  ;;  %556 = vst [vmem:[%s918_s26 + $0x60] sm:$0xff] %v808_v44 }
 0x110   : > { %v812_v46 = vpop.eup %811  ;;  %572 = vst [vmem:[%s918_s26 + $0xe0] sm:$0xff] %v810_v45 }
 0x111   : > { %v814_v47 = vpop.eup %813  ;;  %559 = vst [vmem:[%s918_s26 + $0x78] sm:$0xff] %v812_v46 }
 0x112   : > { %v816_v48 = vpop.eup %815  ;;  %575 = vst [vmem:[%s918_s26 + $0xf8] sm:$0xff] %v814_v47 }
 0x113   : > { %v818_v49 = vpop.eup %817  ;;  %557 = vst [vmem:[%s918_s26 + $0x68] sm:$0xff] %v816_v48 }
 0x114   : > { %573 = vst [vmem:[%s918_s26 + $0xe8] sm:$0xff] %v818_v49 }
 0x115 PF: > { %s13_s12 = sadd.s32 1, %s825_s12  }
 0x116   : > { %p10_p4 = scmp.ge.s32.totalorder %s13_s12, 10  }
 0x118   :  { %12 = sbr.rel (!%p10_p4) target bundleno = 1 (0x1), region = 62 }

</bundles_post_ra>
